<compile_context>
chip_gen: v5e
topology: v5e:2x2
jax: 0.10.0
libtpu: 0.0.40
codegen_flags: <defaults>
</compile_context>

<pallas_src>
import functools

import jax
import jax.numpy as jnp
from jax.experimental import pallas as pl
from jax.experimental.pallas import tpu as pltpu


def _round_up(x, m):
    return ((x + m - 1) // m) * m


def conv_relu_stats_kernel(x_ref, w_ref, b_ref, mask_ref,
                           act_ref, s1_ref, s2_ref,
                           *, KH, KW, W, MROWS):
    """One batch image per grid step.

    x_ref    : (1, H*W, Cin_pad)        bf16  flattened NHWC image
    w_ref    : (KH*KW, Cin_pad, Cout_pad) bf16
    b_ref    : (1, Cout_pad)            f32   conv bias (padded)
    mask_ref : (MROWS, 1)               f32   1.0 on valid output positions
    act_ref  : (1, MROWS, Cout_pad)     f32   ReLU(conv+bias), written once
    s1_ref   : (1, 1, Cout_pad)         f32   per-image sum   of valid activations
    s2_ref   : (1, 1, Cout_pad)         f32   per-image sum-of-squares
    """
    cpad = act_ref.shape[-1]
    xb = x_ref[0]                                   # (H*W, Cin_pad), bf16

    acc = jnp.zeros((MROWS, cpad), jnp.float32)
    # conv as shifted matmuls: input flat row (oh+kh)*W + (ow+kw)
    #   == output flat row (oh*W + ow) + (kh*W + kw)   (stride-1 grid)
    for kh in range(KH):
        for kw in range(KW):
            shift = kh * W + kw                     # static Python int
            lhs = xb[shift:shift + MROWS, :]        # (MROWS, Cin_pad)
            rhs = w_ref[kh * KW + kw]               # (Cin_pad, Cout_pad)
            acc = acc + jnp.dot(lhs, rhs, preferred_element_type=jnp.float32)

    y = jnp.maximum(acc + b_ref[...], 0.0)          # bias + ReLU (f32)
    act_ref[0] = y

    ym = y * mask_ref[...]                          # zero invalid rows for the stats
    s1_ref[0] = jnp.sum(ym, axis=0, keepdims=True)
    s2_ref[0] = jnp.sum(ym * y, axis=0, keepdims=True)


def conv_block(x_nchw, weight, bias, gamma, beta, *, stride=1, eps=1e-5):
    """Forward pass of convBlock. x_nchw: [N,Cin,H,W]; weight: [Cout,Cin,KH,KW]."""
    N, Cin, H, W = x_nchw.shape
    Cout, _, KH, KW = weight.shape
    OH = (H - KH) // stride + 1
    OW = (W - KW) // stride + 1
    OH1 = H - KH + 1                     # stride-1 output rows (kernel computes stride-1 conv)
    MROWS = OH1 * W - (KW - 1)           # flattened rows produced per image

    cin_pad = _round_up(Cin, 8)
    cout_pad = _round_up(Cout, 128)      # lane-dense output / act / weight

    # ---- cheap layout-only glue: NCHW -> flattened NHWC, bf16 MXU operands ----
    x = jnp.transpose(x_nchw, (0, 2, 3, 1)).astype(jnp.float32)            # (N,H,W,Cin)
    x = jnp.pad(x, ((0, 0), (0, 0), (0, 0), (0, cin_pad - Cin)))
    x_flat = x.reshape(N, H * W, cin_pad).astype(jnp.bfloat16)

    w = jnp.transpose(weight, (2, 3, 1, 0)).astype(jnp.float32)            # (KH,KW,Cin,Cout)
    w = jnp.pad(w, ((0, 0), (0, 0), (0, cin_pad - Cin), (0, cout_pad - Cout)))
    w = w.reshape(KH * KW, cin_pad, cout_pad).astype(jnp.bfloat16)

    b = jnp.pad(bias.astype(jnp.float32), (0, cout_pad - Cout)).reshape(1, cout_pad)

    # validity mask over flattened stride-1 rows (handles stride>1 by subsampling)
    flat = jnp.arange(MROWS)
    oh1 = flat // W
    ow1 = flat % W
    valid = ((oh1 % stride == 0) & (oh1 // stride < OH) &
             (ow1 % stride == 0) & (ow1 // stride < OW))
    mask = valid.astype(jnp.float32).reshape(MROWS, 1)

    # ---- single fused kernel: conv + bias + ReLU + per-image BN partial sums ----
    act, s1, s2 = pl.pallas_call(
        functools.partial(conv_relu_stats_kernel, KH=KH, KW=KW, W=W, MROWS=MROWS),
        out_shape=(
            jax.ShapeDtypeStruct((N, MROWS, cout_pad), jnp.float32),
            jax.ShapeDtypeStruct((N, 1, cout_pad), jnp.float32),
            jax.ShapeDtypeStruct((N, 1, cout_pad), jnp.float32),
        ),
        grid_spec=pltpu.PrefetchScalarGridSpec(
            num_scalar_prefetch=0,
            grid=(N,),
            in_specs=[
                pl.BlockSpec((1, H * W, cin_pad), lambda i: (i, 0, 0)),
                pl.BlockSpec((KH * KW, cin_pad, cout_pad), lambda i: (0, 0, 0)),
                pl.BlockSpec((1, cout_pad), lambda i: (0, 0)),
                pl.BlockSpec((MROWS, 1), lambda i: (0, 0)),
            ],
            out_specs=[
                pl.BlockSpec((1, MROWS, cout_pad), lambda i: (i, 0, 0)),
                pl.BlockSpec((1, 1, cout_pad), lambda i: (i, 0, 0)),
                pl.BlockSpec((1, 1, cout_pad), lambda i: (i, 0, 0)),
            ],
        ),
        compiler_params=pltpu.CompilerParams(
            dimension_semantics=("parallel",)),     # megacore-friendly (no cross-grid accum)
    )(x_flat, w, b, mask)

    # ---- tiny scalar glue: reduce partial sums -> BN scale / shift ----
    count = N * OH * OW
    s1_tot = jnp.sum(s1[:, 0, :Cout], axis=0)
    s2_tot = jnp.sum(s2[:, 0, :Cout], axis=0)
    mean = s1_tot / count
    var = s2_tot / count - mean * mean              # biased variance (BN normalization)
    invstd = jax.lax.rsqrt(var + eps)
    scale = gamma.astype(jnp.float32) * invstd
    shift = beta.astype(jnp.float32) - mean * scale

    # ---- epilogue: BN apply fused into the required reshape/slice/transpose ----
    act = jnp.pad(act, ((0, 0), (0, OH1 * W - MROWS), (0, 0)))
    act = act.reshape(N, OH1, W, cout_pad)
    sel = act[:, 0:(OH - 1) * stride + 1:stride, 0:(OW - 1) * stride + 1:stride, :Cout]
    out = sel * scale.reshape(1, 1, 1, Cout) + shift.reshape(1, 1, 1, Cout)
    # TODO(synk): BatchNorm2d running_mean/running_var buffer updates (training-mode
    # side effect) are not produced; only the normalized forward output is returned.
    return jnp.transpose(out, (0, 3, 1, 2))         # back to NCHW (PyTorch convention)


if __name__ == "__main__":
    key = jax.random.PRNGKey(0)
    k_x, k_w, k_b = jax.random.split(key, 3)

    # small shapes consistent with convBlock(in_feature=4, out_feature=8, filter_size=3)
    N, Cin, H, W = 2, 4, 16, 16
    Cout, KH, KW = 8, 3, 3

    x = jax.random.normal(k_x, (N, Cin, H, W), dtype=jnp.float32)

    # deterministic parameter init mirroring the PyTorch module __init__
    fan_in = Cin * KH * KW
    weight = jax.random.normal(k_w, (Cout, Cin, KH, KW), jnp.float32) * jnp.sqrt(2.0 / fan_in)
    bound = 1.0 / jnp.sqrt(jnp.float32(fan_in))
    bias = jax.random.uniform(k_b, (Cout,), jnp.float32, -bound, bound)
    gamma = jnp.ones((Cout,), jnp.float32)
    beta = jnp.zeros((Cout,), jnp.float32)

    out = jax.block_until_ready(conv_block(x, weight, bias, gamma, beta))

    # pure-JAX f32 reference (conv + ReLU + training-mode BN) for a sanity check.
    y_ref = jax.lax.conv_general_dilated(
        x, weight, window_strides=(1, 1), padding="VALID",
        dimension_numbers=("NCHW", "OIHW", "NCHW"))
    y_ref = y_ref + bias.reshape(1, Cout, 1, 1)
    y_ref = jnp.maximum(y_ref, 0.0)
    m_ref = y_ref.mean(axis=(0, 2, 3), keepdims=True)
    v_ref = y_ref.var(axis=(0, 2, 3), keepdims=True)
    y_ref = (y_ref - m_ref) * jax.lax.rsqrt(v_ref + 1e-5) \
            * gamma.reshape(1, Cout, 1, 1) + beta.reshape(1, Cout, 1, 1)

    assert out.shape == (N, Cout, H - KH + 1, W - KW + 1)
    # tolerance loosened vs pure-f32 because the MXU operands are bf16 (accumulation in f32)
    assert jnp.allclose(out, y_ref, atol=5e-2, rtol=5e-2)
    print("KERNEL_OK")
</pallas_src>

<mosaic_0001>
module attributes {stable_mosaic.version = 11 : i64} {
  func.func @conv_relu_stats_kernel(%arg0: i32, %arg1: memref<1x256x8xbf16, #tpu.memory_space<vmem>>, %arg2: memref<9x8x128xbf16, #tpu.memory_space<vmem>>, %arg3: memref<1x128xf32, #tpu.memory_space<vmem>>, %arg4: memref<222x1xf32, #tpu.memory_space<vmem>>, %arg5: memref<1x222x128xf32, #tpu.memory_space<vmem>>, %arg6: memref<1x1x128xf32, #tpu.memory_space<vmem>>, %arg7: memref<1x1x128xf32, #tpu.memory_space<vmem>>) attributes {dimension_semantics = [#tpu.dimension_semantics<parallel>], iteration_bounds = array<i64: 2>, scalar_prefetch = 0 : i64, scratch_operands = 0 : i64, tpu.core_type = #tpu.core_type<tc>, window_params = [{transform_indices = @transform_0, window_bounds = array<i64: 1, 256, 8>}, {pipeline_mode = #tpu.pipeline_mode<synchronous>, transform_indices = @transform_1, window_bounds = array<i64: 9, 8, 128>}, {pipeline_mode = #tpu.pipeline_mode<synchronous>, transform_indices = @transform_2, window_bounds = array<i64: 1, 128>}, {pipeline_mode = #tpu.pipeline_mode<synchronous>, transform_indices = @transform_3, window_bounds = array<i64: 222, 1>}, {transform_indices = @transform_4, window_bounds = array<i64: 1, 222, 128>}, {transform_indices = @transform_5, window_bounds = array<i64: 1, 1, 128>}, {transform_indices = @transform_6, window_bounds = array<i64: 1, 1, 128>}]} {
    %c0 = arith.constant 0 : index
    %c0_0 = arith.constant 0 : index
    %c0_1 = arith.constant 0 : index
    %0 = vector.load %arg1[%c0, %c0_0, %c0_1] : memref<1x256x8xbf16, #tpu.memory_space<vmem>>, vector<1x256x8xbf16>
    %1 = vector.shape_cast %0 : vector<1x256x8xbf16> to vector<256x8xbf16>
    %cst = arith.constant 0.000000e+00 : f32
    %2 = vector.broadcast %cst : f32 to vector<222x128xf32>
    %3 = vector.extract_strided_slice %1 {offsets = [0, 0], sizes = [222, 8], strides = [1, 1]} : vector<256x8xbf16> to vector<222x8xbf16>
    %c0_2 = arith.constant 0 : index
    %c0_3 = arith.constant 0 : index
    %c0_4 = arith.constant 0 : index
    %4 = vector.load %arg2[%c0_2, %c0_3, %c0_4] : memref<9x8x128xbf16, #tpu.memory_space<vmem>>, vector<1x8x128xbf16>
    %5 = vector.shape_cast %4 : vector<1x8x128xbf16> to vector<8x128xbf16>
    %cst_5 = arith.constant dense<0.000000e+00> : vector<222x128xf32>
    %6 = tpu.matmul %3, %5, %cst_5 {dimension_numbers = #tpu.dot_dimension_numbers<[1], [0], [0], [1], [0, 0, 1, 1], [], []>} : vector<222x8xbf16>, vector<8x128xbf16>, vector<222x128xf32> -> vector<222x128xf32>
    %7 = arith.addf %2, %6 : vector<222x128xf32>
    %8 = vector.extract_strided_slice %1 {offsets = [1, 0], sizes = [222, 8], strides = [1, 1]} : vector<256x8xbf16> to vector<222x8xbf16>
    %c1 = arith.constant 1 : index
    %c0_6 = arith.constant 0 : index
    %c0_7 = arith.constant 0 : index
    %9 = vector.load %arg2[%c1, %c0_6, %c0_7] : memref<9x8x128xbf16, #tpu.memory_space<vmem>>, vector<1x8x128xbf16>
    %10 = vector.shape_cast %9 : vector<1x8x128xbf16> to vector<8x128xbf16>
    %cst_8 = arith.constant dense<0.000000e+00> : vector<222x128xf32>
    %11 = tpu.matmul %8, %10, %cst_8 {dimension_numbers = #tpu.dot_dimension_numbers<[1], [0], [0], [1], [0, 0, 1, 1], [], []>} : vector<222x8xbf16>, vector<8x128xbf16>, vector<222x128xf32> -> vector<222x128xf32>
    %12 = arith.addf %7, %11 : vector<222x128xf32>
    %13 = vector.extract_strided_slice %1 {offsets = [2, 0], sizes = [222, 8], strides = [1, 1]} : vector<256x8xbf16> to vector<222x8xbf16>
    %c2 = arith.constant 2 : index
    %c0_9 = arith.constant 0 : index
    %c0_10 = arith.constant 0 : index
    %14 = vector.load %arg2[%c2, %c0_9, %c0_10] : memref<9x8x128xbf16, #tpu.memory_space<vmem>>, vector<1x8x128xbf16>
    %15 = vector.shape_cast %14 : vector<1x8x128xbf16> to vector<8x128xbf16>
    %cst_11 = arith.constant dense<0.000000e+00> : vector<222x128xf32>
    %16 = tpu.matmul %13, %15, %cst_11 {dimension_numbers = #tpu.dot_dimension_numbers<[1], [0], [0], [1], [0, 0, 1, 1], [], []>} : vector<222x8xbf16>, vector<8x128xbf16>, vector<222x128xf32> -> vector<222x128xf32>
    %17 = arith.addf %12, %16 : vector<222x128xf32>
    %18 = vector.extract_strided_slice %1 {offsets = [16, 0], sizes = [222, 8], strides = [1, 1]} : vector<256x8xbf16> to vector<222x8xbf16>
    %c3 = arith.constant 3 : index
    %c0_12 = arith.constant 0 : index
    %c0_13 = arith.constant 0 : index
    %19 = vector.load %arg2[%c3, %c0_12, %c0_13] : memref<9x8x128xbf16, #tpu.memory_space<vmem>>, vector<1x8x128xbf16>
    %20 = vector.shape_cast %19 : vector<1x8x128xbf16> to vector<8x128xbf16>
    %cst_14 = arith.constant dense<0.000000e+00> : vector<222x128xf32>
    %21 = tpu.matmul %18, %20, %cst_14 {dimension_numbers = #tpu.dot_dimension_numbers<[1], [0], [0], [1], [0, 0, 1, 1], [], []>} : vector<222x8xbf16>, vector<8x128xbf16>, vector<222x128xf32> -> vector<222x128xf32>
    %22 = arith.addf %17, %21 : vector<222x128xf32>
    %23 = vector.extract_strided_slice %1 {offsets = [17, 0], sizes = [222, 8], strides = [1, 1]} : vector<256x8xbf16> to vector<222x8xbf16>
    %c4 = arith.constant 4 : index
    %c0_15 = arith.constant 0 : index
    %c0_16 = arith.constant 0 : index
    %24 = vector.load %arg2[%c4, %c0_15, %c0_16] : memref<9x8x128xbf16, #tpu.memory_space<vmem>>, vector<1x8x128xbf16>
    %25 = vector.shape_cast %24 : vector<1x8x128xbf16> to vector<8x128xbf16>
    %cst_17 = arith.constant dense<0.000000e+00> : vector<222x128xf32>
    %26 = tpu.matmul %23, %25, %cst_17 {dimension_numbers = #tpu.dot_dimension_numbers<[1], [0], [0], [1], [0, 0, 1, 1], [], []>} : vector<222x8xbf16>, vector<8x128xbf16>, vector<222x128xf32> -> vector<222x128xf32>
    %27 = arith.addf %22, %26 : vector<222x128xf32>
    %28 = vector.extract_strided_slice %1 {offsets = [18, 0], sizes = [222, 8], strides = [1, 1]} : vector<256x8xbf16> to vector<222x8xbf16>
    %c5 = arith.constant 5 : index
    %c0_18 = arith.constant 0 : index
    %c0_19 = arith.constant 0 : index
    %29 = vector.load %arg2[%c5, %c0_18, %c0_19] : memref<9x8x128xbf16, #tpu.memory_space<vmem>>, vector<1x8x128xbf16>
    %30 = vector.shape_cast %29 : vector<1x8x128xbf16> to vector<8x128xbf16>
    %cst_20 = arith.constant dense<0.000000e+00> : vector<222x128xf32>
    %31 = tpu.matmul %28, %30, %cst_20 {dimension_numbers = #tpu.dot_dimension_numbers<[1], [0], [0], [1], [0, 0, 1, 1], [], []>} : vector<222x8xbf16>, vector<8x128xbf16>, vector<222x128xf32> -> vector<222x128xf32>
    %32 = arith.addf %27, %31 : vector<222x128xf32>
    %33 = vector.extract_strided_slice %1 {offsets = [32, 0], sizes = [222, 8], strides = [1, 1]} : vector<256x8xbf16> to vector<222x8xbf16>
    %c6 = arith.constant 6 : index
    %c0_21 = arith.constant 0 : index
    %c0_22 = arith.constant 0 : index
    %34 = vector.load %arg2[%c6, %c0_21, %c0_22] : memref<9x8x128xbf16, #tpu.memory_space<vmem>>, vector<1x8x128xbf16>
    %35 = vector.shape_cast %34 : vector<1x8x128xbf16> to vector<8x128xbf16>
    %cst_23 = arith.constant dense<0.000000e+00> : vector<222x128xf32>
    %36 = tpu.matmul %33, %35, %cst_23 {dimension_numbers = #tpu.dot_dimension_numbers<[1], [0], [0], [1], [0, 0, 1, 1], [], []>} : vector<222x8xbf16>, vector<8x128xbf16>, vector<222x128xf32> -> vector<222x128xf32>
    %37 = arith.addf %32, %36 : vector<222x128xf32>
    %38 = vector.extract_strided_slice %1 {offsets = [33, 0], sizes = [222, 8], strides = [1, 1]} : vector<256x8xbf16> to vector<222x8xbf16>
    %c7 = arith.constant 7 : index
    %c0_24 = arith.constant 0 : index
    %c0_25 = arith.constant 0 : index
    %39 = vector.load %arg2[%c7, %c0_24, %c0_25] : memref<9x8x128xbf16, #tpu.memory_space<vmem>>, vector<1x8x128xbf16>
    %40 = vector.shape_cast %39 : vector<1x8x128xbf16> to vector<8x128xbf16>
    %cst_26 = arith.constant dense<0.000000e+00> : vector<222x128xf32>
    %41 = tpu.matmul %38, %40, %cst_26 {dimension_numbers = #tpu.dot_dimension_numbers<[1], [0], [0], [1], [0, 0, 1, 1], [], []>} : vector<222x8xbf16>, vector<8x128xbf16>, vector<222x128xf32> -> vector<222x128xf32>
    %42 = arith.addf %37, %41 : vector<222x128xf32>
    %43 = vector.extract_strided_slice %1 {offsets = [34, 0], sizes = [222, 8], strides = [1, 1]} : vector<256x8xbf16> to vector<222x8xbf16>
    %c8 = arith.constant 8 : index
    %c0_27 = arith.constant 0 : index
    %c0_28 = arith.constant 0 : index
    %44 = vector.load %arg2[%c8, %c0_27, %c0_28] : memref<9x8x128xbf16, #tpu.memory_space<vmem>>, vector<1x8x128xbf16>
    %45 = vector.shape_cast %44 : vector<1x8x128xbf16> to vector<8x128xbf16>
    %cst_29 = arith.constant dense<0.000000e+00> : vector<222x128xf32>
    %46 = tpu.matmul %43, %45, %cst_29 {dimension_numbers = #tpu.dot_dimension_numbers<[1], [0], [0], [1], [0, 0, 1, 1], [], []>} : vector<222x8xbf16>, vector<8x128xbf16>, vector<222x128xf32> -> vector<222x128xf32>
    %47 = arith.addf %42, %46 : vector<222x128xf32>
    %c0_30 = arith.constant 0 : index
    %c0_31 = arith.constant 0 : index
    %48 = vector.load %arg3[%c0_30, %c0_31] : memref<1x128xf32, #tpu.memory_space<vmem>>, vector<1x128xf32>
    %49 = vector.broadcast %48 : vector<1x128xf32> to vector<222x128xf32>
    %50 = arith.addf %47, %49 : vector<222x128xf32>
    %cst_32 = arith.constant 0.000000e+00 : f32
    %51 = vector.broadcast %cst_32 : f32 to vector<222x128xf32>
    %52 = arith.maximumf %50, %51 : vector<222x128xf32>
    %c0_33 = arith.constant 0 : index
    %c0_34 = arith.constant 0 : index
    %c0_35 = arith.constant 0 : index
    %53 = vector.load %arg5[%c0_33, %c0_34, %c0_35] : memref<1x222x128xf32, #tpu.memory_space<vmem>>, vector<1x222x128xf32>
    %54 = vector.shape_cast %53 : vector<1x222x128xf32> to vector<222x128xf32>
    %55 = vector.shape_cast %52 : vector<222x128xf32> to vector<1x222x128xf32>
    tpu.vector_store %arg5[%c0_33, %c0_34, %c0_35], %55 {strides = array<i32>} : memref<1x222x128xf32, #tpu.memory_space<vmem>>, vector<1x222x128xf32>,
    %c0_36 = arith.constant 0 : index
    %c0_37 = arith.constant 0 : index
    %56 = vector.load %arg4[%c0_36, %c0_37] : memref<222x1xf32, #tpu.memory_space<vmem>>, vector<222x1xf32>
    %57 = vector.broadcast %56 : vector<222x1xf32> to vector<222x128xf32>
    %58 = arith.mulf %52, %57 : vector<222x128xf32>
    %cst_38 = arith.constant dense<0.000000e+00> : vector<128xf32>
    %59 = vector.multi_reduction <add>, %58, %cst_38 [0] : vector<222x128xf32> to vector<128xf32>
    %60 = vector.shape_cast %59 : vector<128xf32> to vector<1x128xf32>
    %c0_39 = arith.constant 0 : index
    %c0_40 = arith.constant 0 : index
    %c0_41 = arith.constant 0 : index
    %61 = vector.load %arg6[%c0_39, %c0_40, %c0_41] : memref<1x1x128xf32, #tpu.memory_space<vmem>>, vector<1x1x128xf32>
    %62 = vector.shape_cast %61 : vector<1x1x128xf32> to vector<1x128xf32>
    %63 = vector.shape_cast %60 : vector<1x128xf32> to vector<1x1x128xf32>
    tpu.vector_store %arg6[%c0_39, %c0_40, %c0_41], %63 {strides = array<i32>} : memref<1x1x128xf32, #tpu.memory_space<vmem>>, vector<1x1x128xf32>,
    %64 = arith.mulf %58, %52 : vector<222x128xf32>
    %cst_42 = arith.constant dense<0.000000e+00> : vector<128xf32>
    %65 = vector.multi_reduction <add>, %64, %cst_42 [0] : vector<222x128xf32> to vector<128xf32>
    %66 = vector.shape_cast %65 : vector<128xf32> to vector<1x128xf32>
    %c0_43 = arith.constant 0 : index
    %c0_44 = arith.constant 0 : index
    %c0_45 = arith.constant 0 : index
    %67 = vector.load %arg7[%c0_43, %c0_44, %c0_45] : memref<1x1x128xf32, #tpu.memory_space<vmem>>, vector<1x1x128xf32>
    %68 = vector.shape_cast %67 : vector<1x1x128xf32> to vector<1x128xf32>
    %69 = vector.shape_cast %66 : vector<1x128xf32> to vector<1x1x128xf32>
    tpu.vector_store %arg7[%c0_43, %c0_44, %c0_45], %69 {strides = array<i32>} : memref<1x1x128xf32, #tpu.memory_space<vmem>>, vector<1x1x128xf32>,
    return
  }
  func.func @transform_0(%arg0: i32) -> (i32, i32, i32) {
    %c0_i32 = arith.constant 0 : i32
    %c0_i32_0 = arith.constant 0 : i32
    %c0_i32_1 = arith.constant 0 : i32
    return %arg0, %c0_i32, %c0_i32_0 : i32, i32, i32
  }
  func.func @transform_1(%arg0: i32) -> (i32, i32, i32) {
    %c0_i32 = arith.constant 0 : i32
    %c0_i32_0 = arith.constant 0 : i32
    %c0_i32_1 = arith.constant 0 : i32
    %c0_i32_2 = arith.constant 0 : i32
    return %c0_i32, %c0_i32_0, %c0_i32_1 : i32, i32, i32
  }
  func.func @transform_2(%arg0: i32) -> (i32, i32) {
    %c0_i32 = arith.constant 0 : i32
    %c0_i32_0 = arith.constant 0 : i32
    %c0_i32_1 = arith.constant 0 : i32
    return %c0_i32, %c0_i32_0 : i32, i32
  }
  func.func @transform_3(%arg0: i32) -> (i32, i32) {
    %c0_i32 = arith.constant 0 : i32
    %c0_i32_0 = arith.constant 0 : i32
    %c0_i32_1 = arith.constant 0 : i32
    return %c0_i32, %c0_i32_0 : i32, i32
  }
  func.func @transform_4(%arg0: i32) -> (i32, i32, i32) {
    %c0_i32 = arith.constant 0 : i32
    %c0_i32_0 = arith.constant 0 : i32
    %c0_i32_1 = arith.constant 0 : i32
    return %arg0, %c0_i32, %c0_i32_0 : i32, i32, i32
  }
  func.func @transform_5(%arg0: i32) -> (i32, i32, i32) {
    %c0_i32 = arith.constant 0 : i32
    %c0_i32_0 = arith.constant 0 : i32
    %c0_i32_1 = arith.constant 0 : i32
    return %arg0, %c0_i32, %c0_i32_0 : i32, i32, i32
  }
  func.func @transform_6(%arg0: i32) -> (i32, i32, i32) {
    %c0_i32 = arith.constant 0 : i32
    %c0_i32_0 = arith.constant 0 : i32
    %c0_i32_1 = arith.constant 0 : i32
    return %arg0, %c0_i32, %c0_i32_0 : i32, i32, i32
  }
}

</mosaic_0001>

<bundles_post_ra>
// kernel: tpu_custom_call.1
= control target key start
LH: loop header
LB: loop body
LE: loop exit
PB: predicated region body
PF: predicated region fallthrough
CT: control target
= control target key end

     0   :  { %12 = vsyncpa [#allocation3], 0  ;;  %s3514_s0 = inlined_call_operand.vmem [shape: bf16[2,256,8], index: 0, kind: input, shape index: {}]   ;;  %s3515_s1 = inlined_call_operand.vmem [shape: bf16[9,8,128], index: 1, kind: input, shape index: {}]   ;;  %s3516_s2 = inlined_call_operand.vmem [shape: f32[1,128], index: 2, kind: input, shape index: {}]   ;;  %s3517_s3 = inlined_call_operand.vmem [shape: f32[222,1], index: 3, kind: input, shape index: {}]   ;;  %s3518_s4 = inlined_call_operand.vmem [shape: f32[2,222,128], index: 4, kind: output, shape index: {0}]   ;;  %s3519_s5 = inlined_call_operand.hbm [shape: f32[2,1,128], index: 5, kind: output, shape index: {1}]   ;;  %s3520_s6 = inlined_call_operand.hbm [shape: f32[2,1,128], index: 6, kind: output, shape index: {2}]  }
   0x1   :  { %14 = vsyncpa [#allocation3 + $0x1], 0 }
   0x2   :  { %15 = vsyncpa [#allocation5], 0 }
   0x3   :  { %17 = vsyncpa [#allocation5 + $0x1], 0  ;;  %s2577_s21 = smov 0   ;;  %s2579_s22 = smov 0  }
   0x4   :  { %s2581_s23 = smov 0   ;;  %s2583_s24 = smov 0  }
   0x5 LB: > { %s2598_s25 = sadd.s32 4294967295, %s2539_s24   ;;  %s2166_s26 = sadd.s32 4294967294, %s2539_s24   ;;  %s2539_s24 = sphi %s2583_s24, %s3579_s24   ;;  %s2535_s23 = sphi %s2581_s23, %s3578_s23   ;;  %s2531_s22 = sphi %s2579_s22, %s3577_s22   ;;  %s2527_s21 = sphi %s2577_s21, %s3576_s21  }
   0x6   : > { %s2602_s27 = sadd.s32 1, %s2539_s24   ;;  %s145_s28 = sadd.s32 1, %s2535_s23 }
   0x7   : > { %s142_s29 = ssub.s32 %s2539_s24, %s2602_s27  ;;  %p155_p0 = scmp.ne.s32.totalorder %s2535_s23, %s2531_s22 }
   0x8   : > { %p143_p1 = scmp.eq.s32.totalorder %s142_s29, 0  ;;  %p156_p2 = scmp.eq.s32.totalorder %s2598_s25, 1 }
   0x9   : > { %p161_p3 = scmp.ne.s32.totalorder %s2531_s22, %s2527_s21  ;;  %p162_p4 = scmp.eq.s32.totalorder %s2166_s26, 1 }
   0xa   : > { %s2613_s30 = scalar_select %p143_p1, %s2535_s23, %s145_s28  }
   0xb   : > { %p2615_p5 = por %p156_p2, %p155_p0  ;;  %p2619_p6 = por %p162_p4, %p161_p3 }
   0xc   : > { %p2169_p7 = scmp.ge.s32.totalorder %s2539_s24, 1  ;;  %p223_p8 = scmp.lt.s32.totalorder %s2539_s24, 3 }
   0xe   : > { %p224_p9 = pnand %p2169_p7, %p223_p8 }
  0x10   : > { %227 = sbr.rel (%p224_p9) target bundleno = 714 (0x2ca), region = 36 }
  0x15   : > { %v2173_v0 = vld [vmem:[%s3515_s1 + $0x4] sm:$0xf]  ;;  %vm532_vm0 = vcmask 1043456   ;;  %p261_p10 = scmp.lt.s32.totalorder %s2598_s25, 1  ;;  %v2258_v2 = vld [vmem:[%s3515_s1 + $0x8] sm:$0xf]  ;;  %s2041_s14 = scalar_lea.hbm %s3519_s5, %s2598_s25 }
  0x16   : > { %v534_v1 = vsel %vm532_vm0, %v2173_v0, 0  ;;  %v304_v3 = vld [vmem:[%s3515_s1] sm:$0xf]  ;;  %v798_v4 = vsel %vm532_vm0, %v2258_v2, 0  ;;  %v2292_v6 = vld [vmem:[%s3515_s1 + $0x10] sm:$0xf] }
  0x17   : > { %2390 = vmatpush.bf16.msra.mxu1 %v534_v1  ;;  %2391 = vmatpush.bf16.msra.mxu2 %v534_v1  ;;  %s2637_s15 = scalar_select %p261_p10, %s2598_s25, 1  ;;  %v644_v5 = vsel %vm532_vm0, %v304_v3, 0  ;;  %v1043_v7 = vsel %vm532_vm0, %v2292_v6, 0  ;;  %vm377_vm1 = vsmask.f32 7424  ;;  %vm489_vm2 = vcmask 64512  }
  0x18   : > { %543 = vmatpush.bf16.msra.mxu0 %v534_v1  ;;  %2392 = vmatpush.bf16.msra.mxu3 %v534_v1  ;;  %v2273_v45 = vld [vmem:[%s3515_s1 + $0xc] sm:$0xf]  ;;  %vm727_vm3 = vcmask 1046528   ;;  %vm1947_vm4 = vcmask 1045504   ;;  %s3458_s28 = sshll.u32 %s2041_s14, 4  ;;  %s2465_s14 = scalar_lea.hbm %s3519_s5, 2  ;;  %s2046_s28 = int_to_ptr.hbm [resolvable:$true] %s3458_s28 }
  0x19   : > { %s2373_s18 = sshll.u32 %s2637_s15, 7  ;;  %v918_v53 = vsel %vm532_vm0, %v2273_v45, 0  ;;  %s2393_s9 = smul.u32 224, %s2637_s15 }
  0x1a   : > { %s2649_s26 = scalar_lea.vmem %s3514_s0, %s2373_s18  ;;  %s2054_s18 = scalar_lea.hbm %s3520_s6, %s2598_s25 }
  0x1b   : > { %807 = vmatpush.bf16.msrb.mxu2 %v798_v4  ;;  %653 = vmatpush.bf16.msrb.mxu1 %v644_v5  ;;  %v2652_v8 = vld [vmem:[%s2649_s26 + $0x20] sm:$0xff]  ;;  %v2655_v9 = vld [vmem:[%s2649_s26 + $0x28] sm:$0xff]  ;;  %v2703_v37 = vld [vmem:[%s2649_s26 + $0x30] sm:$0xff]  ;;  %s3284_s16 = scalar_lea.vmem %s3518_s4, %s2393_s9  ;;  %s3463_s10 = sshll.u32 %s2054_s18, 4  ;;  %s2059_s10 = int_to_ptr.hbm [resolvable:$true] %s3463_s10 }
  0x1c   : > { %1052 = vmatpush.bf16.msrb.mxu0 %v1043_v7  ;;  %v2658_v10 = vld [vmem:[%s2649_s26 + $0x40] sm:$0xff]  ;;  %v2661_v11 = vld [vmem:[%s2649_s26 + $0x48] sm:$0xff]  ;;  %v410_v14 = vshll.u32 %v2652_v8, 16  ;;  %v414_v15 = vshrl.u32 %v2652_v8, 16  ;;  %v418_v16 = vshll.u32 %v2655_v9, 16  ;;  %3536 = vst [vmem:[#allocation10_spill] sm:$0xff] %v2703_v37  ;;  %927 = vmatpush.bf16.msrb.mxu3 %v918_v53 }
  0x1d   : > { %3534 = vst [vmem:[#allocation8_spill] sm:$0xff] %v2658_v10  ;;  %v2664_v12 = vld [vmem:[%s2649_s26] sm:$0xff]  ;;  %v2667_v13 = vld [vmem:[%s2649_s26 + $0x8] sm:$0xff]  ;;  %v442_v17 = vshll.u32 %v2658_v10, 16  ;;  %v446_v18 = vshrl.u32 %v2658_v10, 16  ;;  %v450_v19 = vshll.u32 %v2661_v11, 16 }
  0x1e   : > { %v379_v20 = vshrl.u32 %v2664_v12, 16  ;;  %v381_v21 = vshll.u32 %v2664_v12, 16  ;;  %v2677_v22 = vrot.slane %v410_v14, 1  ;;  %v420_v23 = vrot.slane %v418_v16, 1  ;;  %v2685_v31 = vld [vmem:[%s2649_s26 + $0x60] sm:$0xff]  ;;  %v2688_v32 = vld [vmem:[%s2649_s26 + $0x68] sm:$0xff] }
  0x1f   : > { %v2679_v24 = vrot.slane %v442_v17, 1  ;;  %v386_v25 = vshll.u32 %v2667_v13, 16  ;;  %v452_v26 = vrot.slane %v450_v19, 1  ;;  %v2706_v38 = vld [vmem:[%s2649_s26 + $0x50] sm:$0xff]  ;;  %v474_v39 = vshll.u32 %v2685_v31, 16  ;;  %v2746_v1 = vld [vmem:[%s2649_s26 + $0x38] sm:$0xff] }
  0x20   : > { %v383_v27 = vrot.slane %v381_v21, 1  ;;  %v416_v28 = vor.u32 %v414_v15, %v2677_v22  ;;  %v478_v40 = vshrl.u32 %v2685_v31, 16  ;;  %v482_v41 = vshll.u32 %v2688_v32, 16  ;;  %v2712_v42 = vld [vmem:[%s2649_s26 + $0x10] sm:$0xff]  ;;  %3538 = vst [vmem:[#allocation12_spill] sm:$0xff] %v2746_v1  ;;  %v2749_v2 = vld [vmem:[%s2649_s26 + $0x58] sm:$0xff] }
  0x21   : > { %v448_v29 = vor.u32 %v446_v18, %v2679_v24  ;;  %v388_v30 = vrot.slane %v386_v25, 1  ;;  %v2714_v43 = vrot.slane %v474_v39, 1  ;;  %v422_v46 = vshrl.u32 %v2655_v9, 16  ;;  %v2752_v3 = vld [vmem:[%s2649_s26 + $0x18] sm:$0xff]  ;;  %s2459_s11 = sshra.s32 %s2046_s28, 4  ;;  %s2460_s11 = int_to_ptr.hbm [resolvable:$true] %s2459_s11 }
  0x22   : > { %v384_v33 = vor.u32 %v383_v27, %v379_v20  ;;  %v2691_v34 = vsel %vm377_vm1, %v416_v28, %v420_v23  ;;  %v484_v44 = vrot.slane %v482_v41, 1  ;;  %v426_v47 = vshll.u32 %v2703_v37, 16  ;;  %v2322_v28 = vld [vmem:[%s3515_s1 + $0x18] sm:$0xf]  ;;  %s2461_s12 = scalar_lea.hbm %s2460_s11, 1  ;;  %p2466_p0 = scmp.lt.s32.totalorder %s2460_s11, %s3519_s5 }
  0x23   : > { %v2694_v35 = vsel %vm377_vm1, %v448_v29, %v452_v26  ;;  %2234 = vmatmul.msk.bf16.vlgmr.msra.gmra.mxu1 %vm489_vm2, %v2691_v34  ;;  %v454_v48 = vshrl.u32 %v2661_v11, 16  ;;  %v458_v49 = vshll.u32 %v2706_v38, 16  ;;  %v480_v50 = vor.u32 %v478_v40, %v2714_v43  ;;  %v2356_v40 = vld [vmem:[%s3515_s1 + $0x20] sm:$0xf]  ;;  %p2462_p11 = scmp.ne.s32.totalorder %s2460_s11, %s2461_s12  ;;  %p2467_p1 = scmp.lt.s32.totalorder %s2465_s14, %s2461_s12 }
  0x24   : > { %3535 = vst [vmem:[#allocation9_spill] sm:$0xff] %v2694_v35  ;;  %2238 = vmatmul.msk.bf16.vlgmr.msra.gmra.mxu2 %vm489_vm2, %v2694_v35  ;;  %v389_v36 = vsel %vm377_vm1, %v384_v33, %v388_v30  ;;  %v390_v51 = vshrl.u32 %v2667_v13, 16  ;;  %v394_v52 = vshll.u32 %v2712_v42, 16  ;;  %v424_v55 = vor.u32 %v422_v46, %v420_v23  ;;  %v2307_v33 = vld [vmem:[%s3515_s1 + $0x14] sm:$0xf] }
  0x25   : > { %2230 = vmatmul.msk.bf16.vlgmr.msra.gmra.mxu0 %vm489_vm2, %v389_v36  ;;  %v2728_v54 = vsel %vm377_vm1, %v480_v50, %v484_v44  ;;  %v428_v56 = vrot.slane %v426_v47, 1  ;;  %v456_v57 = vor.u32 %v454_v48, %v452_v26  ;;  %v460_v58 = vrot.slane %v458_v49, 1  ;;  %p2463_p12 = pnand %p2462_p11, %p2615_p5  ;;  %p2468_p2 = por %p2467_p1, %p2466_p0 }
  0x26   : > { %2242 = vmatmul.msk.bf16.vlgmr.msra.gmra.mxu3 %vm489_vm2, %v2728_v54  ;;  %v392_v59 = vor.u32 %v390_v51, %v388_v30  ;;  %v396_v60 = vrot.slane %v394_v52, 1  ;;  %v486_v0 = vshrl.u32 %v2688_v32, 16  ;;  %v430_v5 = vshrl.u32 %v2703_v37, 16  ;;  %v2341_v30 = vld [vmem:[%s3515_s1 + $0x1c] sm:$0xf] }
  0x27   : > { %v2733_v61 = vsel %vm377_vm1, %v424_v55, %v428_v56  ;;  %v2736_v62 = vsel %vm377_vm1, %v456_v57, %v460_v58  ;;  %v434_v6 = vshll.u32 %v2746_v1, 16  ;;  %v462_v7 = vshrl.u32 %v2706_v38, 16  ;;  %p2464_p13 = pneg %p2463_p12 }
  0x28   : > { %3537 = vst [vmem:[#allocation11_spill] sm:$0xff] %v2736_v62  ;;  %v397_v63 = vsel %vm377_vm1, %v392_v59, %v396_v60  ;;  %v2754_v4 = vor.u32 %v486_v0, %v484_v44  ;;  %v466_v14 = vshll.u32 %v2749_v2, 16  ;;  %v398_v15 = vshrl.u32 %v2712_v42, 16 }
  0x29   : > { %v402_v16 = vshll.u32 %v2752_v3, 16  ;;  %v432_v17 = vor.u32 %v430_v5, %v428_v56  ;;  %v436_v18 = vrot.slane %v434_v6, 1  ;;  %v464_v19 = vor.u32 %v462_v7, %v460_v58  ;;  %p2469_p3 = pnand %p2468_p2, %p2464_p13 }
  0x2a   : > { %v468_v20 = vrot.slane %v466_v14, 1  ;;  %v400_v21 = vor.u32 %v398_v15, %v396_v60  ;;  %v1283_v29 = vsel %vm532_vm0, %v2322_v28, 0  ;;  %v1408_v36 = vsel %vm532_vm0, %v2341_v30, 0 }
  0x2b   : > { %v404_v23 = vrot.slane %v402_v16, 1  ;;  %v2765_v25 = vsel %vm377_vm1, %v432_v17, %v436_v18  ;;  %1292 = vmatpush.bf16.msra.mxu2 %v1283_v29  ;;  %v1163_v39 = vsel %vm532_vm0, %v2307_v33, 0  ;;  %1417 = vmatpush.bf16.msra.mxu3 %v1408_v36  ;;  %v1528_v41 = vsel %vm532_vm0, %v2356_v40, 0 }
  0x2c   : > { %v2768_v26 = vsel %vm377_vm1, %v464_v19, %v468_v20  ;;  %1172 = vmatpush.bf16.msra.mxu1 %v1163_v39  ;;  %1537 = vmatpush.bf16.msra.mxu0 %v1528_v41  ;;  %v438_v44 = vshrl.u32 %v2746_v1, 16  ;;  %v470_v45 = vshrl.u32 %v2749_v2, 16  ;;  %v406_v46 = vshrl.u32 %v2752_v3, 16 }
  0x2d   : > { %v2771_v27 = vsel %vm377_vm1, %v400_v21, %v404_v23  ;;  %v731_v53 = vrot.slane %v2712_v42, 1  ;;  %v737_v58 = vrot.slane %v2655_v9, 1  ;;  %v739_v7 = vrot.slane %v2703_v37, 1 }
  0x2e   : > { %v440_v47 = vor.u32 %v438_v44, %v436_v18  ;;  %v472_v48 = vor.u32 %v470_v45, %v468_v20  ;;  %v408_v49 = vor.u32 %v406_v46, %v404_v23  ;;  %v741_v28 = vrot.slane %v2746_v1, 1 }
  0x2f   : > { %v2891_v17 = vsel %vm727_vm3, %v737_v58, %v739_v7  ;;  %v743_v46 = vrot.slane %v2658_v10, 1 }
  0x30   : > { %v2802_v50 = vsel %vm377_vm1, %v440_v47, %v2679_v24  ;;  %v2806_v51 = vsel %vm377_vm1, %v472_v48, %v2714_v43  ;;  %v2810_v52 = vsel %vm377_vm1, %v408_v49, %v2677_v22  ;;  %v728_v24 = vrot.slane %v2664_v12, 1 }
  0x31   : > { %v729_v43 = vrot.slane %v2667_v13, 1  ;;  %v2919_v36 = vsel %vm727_vm3, %v739_v7, %v741_v28 }
  0x32   : > { %3542 = vst [vmem:[#allocation16_spill] sm:$0xff] %v2919_v36 }
  0x33   : > { %2235 = vmatmul.msk.bf16.gmra.mxu1 %vm489_vm2, %v2733_v61  ;;  %v730_v22 = vsel %vm727_vm3, %v728_v24, %v729_v43  ;;  %v2831_v55 = vsel %vm727_vm3, %v729_v43, %v731_v53  ;;  %v2945_v24 = vsel %vm727_vm3, %v741_v28, %v743_v46 }
  0x34   : > { %2239 = vmatmul.msk.bf16.gmra.mxu2 %vm489_vm2, %v2736_v62  ;;  %3546 = vst [vmem:[#allocation20_spill] sm:$0xff] %v2945_v24 }
  0x35   : > { %2231 = vmatmul.msk.bf16.gmra.mxu0 %vm489_vm2, %v397_v63 }
  0x36   : > { %2243 = vmatmul.msk.bf16.gmra.mxu3 %vm489_vm2, %v2754_v4 }
  0x43   : > { %2236 = vmatmul.msk.bf16.gmra.mxu1 %vm489_vm2, %v2765_v25 }
  0x44   : > { %2240 = vmatmul.msk.bf16.gmra.mxu2 %vm489_vm2, %v2768_v26 }
  0x45   : > { %2232 = vmatmul.msk.bf16.gmra.mxu0 %vm489_vm2, %v2771_v27 }
  0x46   : > { %2278 = vmatmul.msk.bf16.vlgmr.msrb.gmra.mxu3 %vm489_vm2, %v2667_v13 }
  0x53   : > { %2237 = vmatmul.msk.bf16.gmra.mxu1 %vm489_vm2, %v2802_v50 }
  0x54   : > { %2241 = vmatmul.msk.bf16.gmra.mxu2 %vm489_vm2, %v2806_v51 }
  0x55   : > { %2233 = vmatmul.msk.bf16.gmra.mxu0 %vm489_vm2, %v2810_v52 }
  0x56   : > { %2279 = vmatmul.msk.bf16.gmra.mxu3 %vm489_vm2, %v2712_v42 }
  0x63   : > { %2244 = vmatmul.msk.bf16.vlgmr.msrb.gmra.mxu1 %vm489_vm2, %v2664_v12  ;;  %v733_v12 = vrot.slane %v2752_v3, 1 }
  0x64   : > { %2259 = vmatmul.msk.bf16.vlgmr.msrb.gmra.mxu2 %vm489_vm2, %v730_v22 }
  0x65   : > { %2293 = vmatmul.msk.bf16.vlgmr.msrb.gmra.mxu0 %vm489_vm2, %v397_v63  ;;  %v2843_v56 = vsel %vm727_vm3, %v731_v53, %v733_v12 }
  0x66   : > { %2280 = vmatmul.msk.bf16.gmra.mxu3 %vm489_vm2, %v2752_v3 }
  0x73   : > { %2245 = vmatmul.msk.bf16.gmra.mxu1 %vm489_vm2, %v2667_v13  ;;  %v735_v13 = vrot.slane %v2652_v8, 1 }
  0x74   : > { %2260 = vmatmul.msk.bf16.gmra.mxu2 %vm489_vm2, %v2831_v55 }
  0x75   : > { %2294 = vmatmul.msk.bf16.gmra.mxu0 %vm489_vm2, %v2771_v27  ;;  %v2855_v57 = vsel %vm727_vm3, %v733_v12, %v735_v13  ;;  %v2869_v60 = vsel %vm727_vm3, %v735_v13, %v737_v58  ;;  %v745_v58 = vrot.slane %v2661_v11, 1 }
  0x76   : > { %2281 = vmatmul.msk.bf16.gmra.mxu3 %vm489_vm2, %v2652_v8 }
  0x83   : > { %2246 = vmatmul.msk.bf16.gmra.mxu1 %vm489_vm2, %v2712_v42 }
  0x84   : > { %2261 = vmatmul.msk.bf16.gmra.mxu2 %vm489_vm2, %v2843_v56 }
  0x85   : > { %2295 = vmatmul.msk.bf16.gmra.mxu0 %vm489_vm2, %v2810_v52 }
  0x86   : > { %2282 = vmatmul.msk.bf16.gmra.mxu3 %vm489_vm2, %v2655_v9 }
  0x93   : > { %2247 = vmatmul.msk.bf16.gmra.mxu1 %vm489_vm2, %v2752_v3 }
  0x94   : > { %2262 = vmatmul.msk.bf16.gmra.mxu2 %vm489_vm2, %v2855_v57 }
  0x95   : > { %2296 = vmatmul.msk.bf16.gmra.mxu0 %vm489_vm2, %v2691_v34 }
  0x96   : > { %2283 = vmatmul.msk.bf16.gmra.mxu3 %vm489_vm2, %v2703_v37 }
  0xa0   : > { %v2866_v59 = vpop.f32.mrf.mxu1 }
  0xa2   : > { %v545_v63 = vpop.f32.mrf.mxu0 }
  0xa3   : > { %2248 = vmatmul.msk.bf16.gmra.mxu1 %vm489_vm2, %v2652_v8 }
  0xa4   : > { %2263 = vmatmul.msk.bf16.gmra.mxu2 %vm489_vm2, %v2869_v60 }
  0xa5   : > { %2297 = vmatmul.msk.bf16.gmra.mxu0 %vm489_vm2, %v2733_v61 }
  0xa6   : > { %2284 = vmatmul.msk.bf16.gmra.mxu3 %vm489_vm2, %v2746_v1 }
  0xa7   : > { %v2877_v0 = vpop.f32.mrf.mxu2 }
  0xa8   : > { %v2879_v5 = vpop.f32.mrf.mxu1 }
  0xa9   : > { %v2886_v15 = vpop.f32.mrf.mxu3 }
  0xaa   : > { %v547_v6 = vpop.f32.mrf.mxu0  ;;  %3539 = vst [vmem:[#allocation13_spill] sm:$0xff] %v2886_v15 }
  0xaf   : > { %v2884_v14 = vpop.f32.mrf.mxu2 }
  0xb0   : > { %v2888_v16 = vpop.f32.mrf.mxu1 }
  0xb1   : > { %v2903_v20 = vpop.f32.mrf.mxu3 }
  0xb2   : > { %v2893_v18 = vpop.f32.mrf.mxu0  ;;  %3540 = vst [vmem:[#allocation14_spill] sm:$0xff] %v2903_v20 }
  0xb3   : > { %2249 = vmatmul.msk.bf16.gmra.mxu1 %vm489_vm2, %v2655_v9 }
  0xb4   : > { %2264 = vmatmul.msk.bf16.gmra.mxu2 %vm489_vm2, %v2891_v17 }
  0xb5   : > { %2298 = vmatmul.msk.bf16.gmra.mxu0 %vm489_vm2, %v2765_v25 }
  0xb6   : > { %2285 = vmatmul.msk.bf16.gmra.mxu3 %vm489_vm2, %v2658_v10 }
  0xb7   : > { %v2901_v19 = vpop.f32.mrf.mxu2 }
  0xb8   : > { %v2905_v21 = vpop.f32.mrf.mxu1 }
  0xb9   : > { %v2914_v30 = vpop.f32.mrf.mxu3 }
  0xba   : > { %v2907_v23 = vpop.f32.mrf.mxu0  ;;  %3541 = vst [vmem:[#allocation15_spill] sm:$0xff] %v2914_v30  ;;  %v2967_v30 = vsel %vm727_vm3, %v743_v46, %v745_v58 }
  0xbb   : > { %3549 = vst [vmem:[#allocation23_spill] sm:$0xff] %v2967_v30 }
  0xbf   : > { %v2912_v29 = vpop.f32.mrf.mxu2 }
  0xc0   : > { %v2916_v33 = vpop.f32.mrf.mxu1 }
  0xc1   : > { %v2931_v41 = vpop.f32.mrf.mxu3 }
  0xc2   : > { %v2921_v39 = vpop.f32.mrf.mxu0  ;;  %3544 = vst [vmem:[#allocation18_spill] sm:$0xff] %v2931_v41 }
  0xc3   : > { %2250 = vmatmul.msk.bf16.gmra.mxu1 %vm489_vm2, %v2703_v37 }
  0xc4   : > { %2265 = vmatmul.msk.bf16.gmra.mxu2 %vm489_vm2, %v2919_v36 }
  0xc5   : > { %2299 = vmatmul.msk.bf16.gmra.mxu0 %vm489_vm2, %v2802_v50 }
  0xc6   : > { %2286 = vmatmul.msk.bf16.gmra.mxu3 %vm489_vm2, %v2661_v11 }
  0xc7   : > { %v2929_v40 = vpop.f32.mrf.mxu2 }
  0xc8   : > { %3543 = vst [vmem:[#allocation17_spill] sm:$0xff] %v2929_v40  ;;  %v2933_v44 = vpop.f32.mrf.mxu1 }
  0xc9   : > { %v929_v48 = vpop.f32.mrf.mxu3 }
  0xca   : > { %v2935_v45 = vpop.f32.mrf.mxu0 }
  0xcf   : > { %v2940_v47 = vpop.f32.mrf.mxu2 }
  0xd0   : > { %3545 = vst [vmem:[#allocation19_spill] sm:$0xff] %v2940_v47  ;;  %v2942_v49 = vpop.f32.mrf.mxu1 }
  0xd1   : > { %v931_v53 = vpop.f32.mrf.mxu3 }
  0xd2   : > { %v2947_v43 = vpop.f32.mrf.mxu0 }
  0xd3   : > { %2251 = vmatmul.msk.bf16.gmra.mxu1 %vm489_vm2, %v2746_v1 }
  0xd4   : > { %2266 = vmatmul.msk.bf16.gmra.mxu2 %vm489_vm2, %v2945_v24 }
  0xd5   : > { %2300 = vmatmul.msk.bf16.gmra.mxu0 %vm489_vm2, %v2694_v35 }
  0xd6   : > { %2287 = vmatmul.msk.bf16.gmra.mxu3 %vm489_vm2, %v2706_v38 }
  0xd7   : > { %v2955_v22 = vpop.f32.mrf.mxu2 }
  0xd8   : > { %3547 = vst [vmem:[#allocation21_spill] sm:$0xff] %v2955_v22  ;;  %v2957_v12 = vpop.f32.mrf.mxu1 }
  0xd9   : > { %v934_v28 = vpop.f32.mrf.mxu3 }
  0xda   : > { %v2959_v13 = vpop.f32.mrf.mxu0 }
  0xdf   : > { %v2964_v7 = vpop.f32.mrf.mxu2 }
  0xe0   : > { %3548 = vst [vmem:[#allocation22_spill] sm:$0xff] %v2964_v7  ;;  %v655_v41 = vpop.f32.mrf.mxu1 }
  0xe1   : > { %v656_v20 = vadd.f32 %v655_v41, %v545_v63  ;;  %v936_v24 = vpop.f32.mrf.mxu3  ;;  %v747_v41 = vrot.slane %v2706_v38, 1 }
  0xe2   : > { %v1054_v15 = vpop.f32.mrf.mxu0 }
  0xe3   : > { %2252 = vmatmul.msk.bf16.gmra.mxu1 %vm489_vm2, %v2658_v10 }
  0xe4   : > { %2267 = vmatmul.msk.bf16.gmra.mxu2 %vm489_vm2, %v2967_v30 }
  0xe5   : > { %2301 = vmatmul.msk.bf16.gmra.mxu0 %vm489_vm2, %v2736_v62  ;;  %v2981_v62 = vsel %vm727_vm3, %v745_v58, %v747_v41 }
  0xe6   : > { %2288 = vmatmul.msk.bf16.gmra.mxu3 %vm489_vm2, %v2749_v2 }
  0xe7   : > { %v809_v22 = vpop.f32.mrf.mxu2 }
  0xe8   : > { %v879_v1 = vadd.f32 %v809_v22, %v656_v20  ;;  %v657_v7 = vpop.f32.mrf.mxu1 }
  0xe9   : > { %v658_v35 = vadd.f32 %v657_v7, %v547_v6  ;;  %v939_v10 = vpop.f32.mrf.mxu3 }
  0xea   : > { %v999_v47 = vadd.f32 %v929_v48, %v879_v1  ;;  %v1056_v40 = vpop.f32.mrf.mxu0 }
  0xec   : > { %v2977_v63 = vadd.f32 %v1054_v15, %v999_v47 }
  0xef   : > { %v811_v46 = vpop.f32.mrf.mxu2 }
  0xf0   : > { %v880_v30 = vadd.f32 %v811_v46, %v658_v35  ;;  %v660_v36 = vpop.f32.mrf.mxu1 }
  0xf1   : > { %v661_v20 = vadd.f32 %v660_v36, %v2893_v18  ;;  %v941_v15 = vpop.f32.mrf.mxu3 }
  0xf2   : > { %v1000_v37 = vadd.f32 %v931_v53, %v880_v30  ;;  %v1059_v1 = vpop.f32.mrf.mxu0  ;;  %v749_v53 = vrot.slane %v2749_v2, 1 }
  0xf3   : > { %2253 = vmatmul.msk.bf16.gmra.mxu1 %vm489_vm2, %v2661_v11 }
  0xf4   : > { %2268 = vmatmul.msk.bf16.gmra.mxu2 %vm489_vm2, %v2981_v62  ;;  %v2988_v6 = vadd.f32 %v1056_v40, %v1000_v37  ;;  %v2999_v46 = vsel %vm727_vm3, %v747_v41, %v749_v53 }
  0xf5   : > { %2302 = vmatmul.msk.bf16.gmra.mxu0 %vm489_vm2, %v2768_v26 }
  0xf6   : > { %2289 = vmatmul.msk.bf16.gmra.mxu3 %vm489_vm2, %v2685_v31 }
  0xf7   : > { %v814_v35 = vpop.f32.mrf.mxu2 }
  0xf8   : > { %v881_v47 = vadd.f32 %v814_v35, %v661_v20  ;;  %v662_v48 = vpop.f32.mrf.mxu1 }
  0xf9   : > { %v663_v30 = vadd.f32 %v662_v48, %v2907_v23  ;;  %v944_v40 = vpop.f32.mrf.mxu3 }
  0xfa   : > { %v1001_v22 = vadd.f32 %v934_v28, %v881_v47  ;;  %v1061_v18 = vpop.f32.mrf.mxu0 }
  0xfc   : > { %v2995_v36 = vadd.f32 %v1059_v1, %v1001_v22 }
  0xff   : > { %v816_v37 = vpop.f32.mrf.mxu2 }
 0x100   : > { %v882_v58 = vadd.f32 %v816_v37, %v663_v30  ;;  %v665_v7 = vpop.f32.mrf.mxu1 }
 0x101   : > { %v666_v28 = vadd.f32 %v665_v7, %v2921_v39  ;;  %v946_v47 = vpop.f32.mrf.mxu3 }
 0x102   : > { %v1002_v20 = vadd.f32 %v936_v24, %v882_v58  ;;  %v1064_v35 = vpop.f32.mrf.mxu0 }
 0x103   : > { %2254 = vmatmul.msk.bf16.gmra.mxu1 %vm489_vm2, %v2706_v38 }
 0x104   : > { %2269 = vmatmul.msk.bf16.gmra.mxu2 %vm489_vm2, %v2999_v46  ;;  %v3006_v23 = vadd.f32 %v1061_v18, %v1002_v20  ;;  %v751_v18 = vrot.slane %v2685_v31, 1 }
 0x105   : > { %2303 = vmatmul.msk.bf16.gmra.mxu0 %vm489_vm2, %v2806_v51 }
 0x106   : > { %3550 = vst [vmem:[#allocation24_spill] sm:$0xff] %v3006_v23  ;;  %2290 = vmatmul.msk.bf16.gmra.mxu3 %vm489_vm2, %v2688_v32  ;;  %v3017_v23 = vsel %vm727_vm3, %v749_v53, %v751_v18 }
 0x107   : > { %v819_v1 = vpop.f32.mrf.mxu2 }
 0x108   : > { %v883_v48 = vadd.f32 %v819_v1, %v666_v28  ;;  %v667_v41 = vpop.f32.mrf.mxu1  ;;  %v3029_v1 = vld [vmem:[%s2649_s26 + $0x70] sm:$0xff] }
 0x109   : > { %v668_v24 = vadd.f32 %v667_v41, %v2935_v45  ;;  %v949_v58 = vpop.f32.mrf.mxu3 }
 0x10a   : > { %v1003_v22 = vadd.f32 %v939_v10, %v883_v48  ;;  %v1066_v39 = vpop.f32.mrf.mxu0 }
 0x10c   : > { %v3013_v30 = vadd.f32 %v1064_v35, %v1003_v22 }
 0x10e   : > { %3551 = vst [vmem:[#allocation25_spill] sm:$0xff] %v3013_v30 }
 0x10f   : > { %v821_v37 = vpop.f32.mrf.mxu2 }
 0x110   : > { %v884_v7 = vadd.f32 %v821_v37, %v668_v24  ;;  %v670_v20 = vpop.f32.mrf.mxu1  ;;  %v1029_v37 = vshll.u32 %v3029_v1, 16 }
 0x111   : > { %v671_v10 = vadd.f32 %v670_v20, %v2947_v43  ;;  %v951_v53 = vpop.f32.mrf.mxu3 }
 0x112   : > { %v1004_v28 = vadd.f32 %v941_v15, %v884_v7  ;;  %v1069_v45 = vpop.f32.mrf.mxu0  ;;  %v3038_v7 = vrot.slane %v2688_v32, 1  ;;  %v1031_v20 = vrot.slane %v1029_v37, 1  ;;  %v1033_v37 = vshrl.u32 %v3029_v1, 16 }
 0x113   : > { %2255 = vmatmul.msk.bf16.gmra.mxu1 %vm489_vm2, %v2749_v2 }
 0x114   : > { %2270 = vmatmul.msk.bf16.gmra.mxu2 %vm489_vm2, %v3017_v23  ;;  %v3024_v35 = vadd.f32 %v1066_v39, %v1004_v28 }
 0x115   : > { %2304 = vmatmul.msk.bf16.gmra.mxu0 %vm489_vm2, %v2728_v54 }
 0x116   : > { %3552 = vst [vmem:[#allocation26_spill] sm:$0xff] %v3024_v35  ;;  %2291 = vmatmul.msk.bf16.gmra.mxu3 %vm489_vm2, %v3029_v1 }
 0x117   : > { %v824_v48 = vpop.f32.mrf.mxu2 }
 0x118   : > { %v885_v41 = vadd.f32 %v824_v48, %v671_v10  ;;  %v672_v15 = vpop.f32.mrf.mxu1 }
 0x119   : > { %v673_v43 = vadd.f32 %v672_v15, %v2959_v13  ;;  %v954_v35 = vpop.f32.mrf.mxu3 }
 0x11a   : > { %v1005_v22 = vadd.f32 %v944_v40, %v885_v41  ;;  %v1071_v24 = vpop.f32.mrf.mxu0  ;;  %v3042_v40 = vsel %vm727_vm3, %v751_v18, %v3038_v7  ;;  %v3046_v41 = vsel %vm377_vm1, %v2754_v4, %v1031_v20 }
 0x11c   : > { %v3035_v39 = vadd.f32 %v1069_v45, %v1005_v22 }
 0x11e   : > { %3553 = vst [vmem:[#allocation27_spill] sm:$0xff] %v3035_v39 }
 0x11f   : > { %v826_v28 = vpop.f32.mrf.mxu2 }
 0x120   : > { %v886_v30 = vadd.f32 %v826_v28, %v673_v43  ;;  %v675_v10 = vpop.f32.mrf.mxu1 }
 0x121   : > { %v676_v18 = vadd.f32 %v675_v10, %v2866_v59  ;;  %v3063_v59 = vor.u32 %v1033_v37, %v1031_v20 }
 0x122   : > { %v1006_v13 = vadd.f32 %v946_v47, %v886_v30  ;;  %v1074_v48 = vpop.f32.mrf.mxu0  ;;  %v956_v47 = vpop.f32.mrf.mxu3 }
 0x123   : > { %2256 = vmatmul.msk.bf16.gmra.mxu1 %vm489_vm2, %v2685_v31 }
 0x124   : > { %2271 = vmatmul.msk.bf16.gmra.mxu2 %vm489_vm2, %v3042_v40  ;;  %v3052_v45 = vadd.f32 %v1071_v24, %v1006_v13 }
 0x125   : > { %2305 = vmatmul.msk.bf16.gmra.mxu0 %vm489_vm2, %v3046_v41 }
 0x126   : > { %3554 = vst [vmem:[#allocation28_spill] sm:$0xff] %v3052_v45  ;;  %2342 = vmatmul.msk.bf16.vlgmr.msra.gmra.mxu3 %vm489_vm2, %v2771_v27 }
 0x127   : > { %v829_v15 = vpop.f32.mrf.mxu2 }
 0x128   : > { %v887_v30 = vadd.f32 %v829_v15, %v676_v18  ;;  %v677_v22 = vpop.f32.mrf.mxu1 }
 0x129   : > { %v678_v24 = vadd.f32 %v677_v22, %v2879_v5 }
 0x12a   : > { %v1007_v43 = vadd.f32 %v949_v58, %v887_v30  ;;  %v1076_v4 = vpop.f32.mrf.mxu0  ;;  %v959_v13 = vpop.f32.mrf.mxu3 }
 0x12c   : > { %v3059_v31 = vadd.f32 %v1074_v48, %v1007_v43 }
 0x12f   : > { %v831_v28 = vpop.f32.mrf.mxu2 }
 0x130   : > { %v888_v45 = vadd.f32 %v831_v28, %v678_v24  ;;  %v680_v39 = vpop.f32.mrf.mxu1 }
 0x131   : > { %v681_v5 = vadd.f32 %v680_v39, %v2888_v16 }
 0x132   : > { %v1008_v10 = vadd.f32 %v951_v53, %v888_v45  ;;  %v1079_v18 = vpop.f32.mrf.mxu0  ;;  %v961_v48 = vpop.f32.mrf.mxu3  ;;  %v2541_v45 = vmov 0  }
 0x133   : > { %2257 = vmatmul.msk.bf16.gmra.mxu1 %vm489_vm2, %v2688_v32  ;;  %v1725_v32 = vld [vmem:[%s3517_s3] sm:$0xff]  ;;  %2439 = vset.pattern.permute.xlu0 %v2541_v45 }
 0x134   : > { %2272 = vmatmul.msk.bf16.gmra.mxu2 %vm489_vm2, %v3038_v7  ;;  %v3069_v27 = vadd.f32 %v1076_v4, %v1008_v10  ;;  %2440 = vset.pattern.permute.xlu1 %v2541_v45 }
 0x135   : > { %2306 = vmatmul.msk.bf16.gmra.mxu0 %vm489_vm2, %v3063_v59  ;;  %1755 = vperm.xlu0 %2439, %v1725_v32  }
 0x136   : > { %2343 = vmatmul.msk.bf16.gmra.mxu3 %vm489_vm2, %v2810_v52  ;;  %2441 = vset.pattern.permute.xlu2 %v2541_v45  ;;  %v1726_v52 = vld [vmem:[%s3517_s3 + $0x8] sm:$0xff] }
 0x137   : > { %v834_v58 = vpop.f32.mrf.mxu2 }
 0x138   : > { %v889_v15 = vadd.f32 %v834_v58, %v681_v5  ;;  %v682_v20 = vpop.f32.mrf.mxu1 }
 0x139   : > { %v683_v16 = vadd.f32 %v682_v20, %v2905_v21 }
 0x13a   : > { %v1009_v30 = vadd.f32 %v954_v35, %v889_v15  ;;  %v1081_v53 = vpop.f32.mrf.mxu0  ;;  %v964_v43 = vpop.f32.mrf.mxu3 }
 0x13c   : > { %v3079_v22 = vadd.f32 %v1079_v18, %v1009_v30 }
 0x13d   : > { %1760 = vperm.xlu0 %2439, %v1726_v52  }
 0x13f   : > { %v836_v39 = vpop.f32.mrf.mxu2 }
 0x140   : > { %v890_v35 = vadd.f32 %v836_v39, %v683_v16  ;;  %v685_v4 = vpop.f32.mrf.mxu1 }
 0x141   : > { %v686_v21 = vadd.f32 %v685_v4, %v2916_v33 }
 0x142   : > { %v1010_v37 = vadd.f32 %v956_v47, %v890_v35  ;;  %v1084_v24 = vpop.f32.mrf.mxu0  ;;  %v966_v10 = vpop.f32.mrf.mxu3 }
 0x143   : > { %2308 = vmatmul.msk.bf16.vlgmr.msra.gmra.mxu1 %vm489_vm2, %v2831_v55 }
 0x144   : > { %2327 = vmatmul.msk.bf16.vlgmr.msra.gmra.mxu2 %vm489_vm2, %v2712_v42  ;;  %v3086_v28 = vadd.f32 %v1081_v53, %v1010_v37  ;;  %v1727_v42 = vld [vmem:[%s3517_s3 + $0x10] sm:$0xff] }
 0x145   : > { %2357 = vmatmul.msk.bf16.vlgmr.msra.gmra.mxu0 %vm489_vm2, %v2843_v56  ;;  %1765 = vperm.xlu1 %2440, %v1727_v42  }
 0x146   : > { %2344 = vmatmul.msk.bf16.gmra.mxu3 %vm489_vm2, %v2691_v34  ;;  %v1728_v34 = vld [vmem:[%s3517_s3 + $0x18] sm:$0xff] }
 0x147   : > { %v839_v47 = vpop.f32.mrf.mxu2 }
 0x148   : > { %v891_v18 = vadd.f32 %v839_v47, %v686_v21  ;;  %v687_v5 = vpop.f32.mrf.mxu1 }
 0x149   : > { %v688_v20 = vadd.f32 %v687_v5, %v2933_v44 }
 0x14a   : > { %v1011_v55 = vadd.f32 %v959_v13, %v891_v18  ;;  %v1086_v58 = vpop.f32.mrf.mxu0  ;;  %v969_v30 = vpop.f32.mrf.mxu3 }
 0x14c   : > { %v3099_v15 = vadd.f32 %v1084_v24, %v1011_v55 }
 0x14d   : > { %1770 = vperm.xlu1 %2440, %v1728_v34  }
 0x14f   : > { %v841_v33 = vpop.f32.mrf.mxu2 }
 0x150   : > { %v892_v53 = vadd.f32 %v841_v33, %v688_v20  ;;  %v690_v32 = vpop.f32.mrf.mxu1 }
 0x151   : > { %v691_v44 = vadd.f32 %v690_v32, %v2942_v49 }
 0x152   : > { %v1012_v45 = vadd.f32 %v961_v48, %v892_v53  ;;  %v1089_v16 = vpop.f32.mrf.mxu0  ;;  %v971_v39 = vpop.f32.mrf.mxu3 }
 0x153   : > { %2309 = vmatmul.msk.bf16.gmra.mxu1 %vm489_vm2, %v2843_v56 }
 0x154   : > { %2328 = vmatmul.msk.bf16.gmra.mxu2 %vm489_vm2, %v2752_v3  ;;  %v3106_v13 = vadd.f32 %v1086_v58, %v1012_v45 }
 0x155   : > { %2358 = vmatmul.msk.bf16.gmra.mxu0 %vm489_vm2, %v2855_v57 }
 0x156   : > { %2345 = vmatmul.msk.bf16.gmra.mxu3 %vm489_vm2, %v2733_v61 }
 0x157   : > { %v844_v48 = vpop.f32.mrf.mxu2 }
 0x158   : > { %v893_v35 = vadd.f32 %v844_v48, %v691_v44  ;;  %v692_v4 = vpop.f32.mrf.mxu1 }
 0x159   : > { %v693_v24 = vadd.f32 %v692_v4, %v2957_v12 }
 0x15a   : > { %v1013_v56 = vadd.f32 %v964_v43, %v893_v35  ;;  %v1091_v37 = vpop.f32.mrf.mxu0  ;;  %v974_v21 = vpop.f32.mrf.mxu3 }
 0x15c   : > { %v3116_v3 = vadd.f32 %v1089_v16, %v1013_v56  ;;  %v1730_v56 = vld [vmem:[%s3517_s3 + $0x28] sm:$0xff] }
 0x15f   : > { %v846_v52 = vpop.f32.mrf.mxu2 }
 0x160   : > { %v894_v47 = vadd.f32 %v846_v52, %v693_v24  ;;  %v695_v18 = vpop.f32.mrf.mxu1 }
 0x161   : > { %v696_v61 = vadd.f32 %v695_v18, %v2877_v0 }
 0x162   : > { %v1014_v5 = vadd.f32 %v966_v10, %v894_v47  ;;  %v1094_v49 = vpop.f32.mrf.mxu0  ;;  %v976_v55 = vpop.f32.mrf.mxu3 }
 0x163   : > { %2310 = vmatmul.msk.bf16.gmra.mxu1 %vm489_vm2, %v2855_v57  ;;  %v1731_v57 = vld [vmem:[%s3517_s3 + $0x30] sm:$0xff] }
 0x164   : > { %2329 = vmatmul.msk.bf16.gmra.mxu2 %vm489_vm2, %v2652_v8  ;;  %v3123_v43 = vadd.f32 %v1091_v37, %v1014_v5  ;;  %1785 = vperm.xlu0 %2439, %v1731_v57  }
 0x165   : > { %2359 = vmatmul.msk.bf16.gmra.mxu0 %vm489_vm2, %v2869_v60 }
 0x166   : > { %2346 = vmatmul.msk.bf16.gmra.mxu3 %vm489_vm2, %v2765_v25  ;;  %v1729_v25 = vld [vmem:[%s3517_s3 + $0x20] sm:$0xff] }
 0x167   : > { %v849_v12 = vpop.f32.mrf.mxu2  ;;  %1775 = vperm.xlu2 %2441, %v1729_v25  }
 0x168   : > { %v895_v58 = vadd.f32 %v849_v12, %v696_v61  ;;  %v697_v42 = vpop.f32.mrf.mxu1  ;;  %v3557_v12 = vld [vmem:[#allocation17_spill] sm:$0xff] }
 0x169   : > { %v698_v33 = vadd.f32 %v697_v42, %v2884_v14  ;;  %v1732_v14 = vld [vmem:[%s3517_s3 + $0x38] sm:$0xff] }
 0x16a   : > { %v1015_v20 = vadd.f32 %v969_v30, %v895_v58  ;;  %v1096_v10 = vpop.f32.mrf.mxu0  ;;  %v979_v0 = vpop.f32.mrf.mxu3  ;;  %1790 = vperm.xlu1 %2440, %v1732_v14  }
 0x16c   : > { %v3133_v8 = vadd.f32 %v1094_v49, %v1015_v20 }
 0x16f   : > { %v851_v53 = vpop.f32.mrf.mxu2  ;;  %1780 = vperm.xlu2 %2441, %v1730_v56   ;;  %v3562_v56 = vld [vmem:[#allocation21_spill] sm:$0xff] }
 0x170   : > { %v896_v32 = vadd.f32 %v851_v53, %v698_v33  ;;  %v700_v45 = vpop.f32.mrf.mxu1  ;;  %v1735_v33 = vld [vmem:[%s3517_s3 + $0x50] sm:$0xff] }
 0x171   : > { %v701_v44 = vadd.f32 %v700_v45, %v2901_v19  ;;  %v3558_v53 = vld [vmem:[#allocation9_spill] sm:$0xff]  ;;  %v3559_v45 = vld [vmem:[#allocation19_spill] sm:$0xff] }
 0x172   : > { %v1016_v16 = vadd.f32 %v971_v39, %v896_v32  ;;  %v1099_v34 = vpop.f32.mrf.mxu0  ;;  %v981_v48 = vpop.f32.mrf.mxu3  ;;  %1805 = vperm.xlu1 %2440, %v1735_v33  }
 0x173   : > { %2311 = vmatmul.msk.bf16.gmra.mxu1 %vm489_vm2, %v2869_v60 }
 0x174   : > { %2330 = vmatmul.msk.bf16.gmra.mxu2 %vm489_vm2, %v2655_v9  ;;  %v3140_v30 = vadd.f32 %v1096_v10, %v1016_v16 }
 0x175   : > { %2360 = vmatmul.msk.bf16.gmra.mxu0 %vm489_vm2, %v2891_v17 }
 0x176   : > { %2347 = vmatmul.msk.bf16.gmra.mxu3 %vm489_vm2, %v2802_v50  ;;  %v3556_v50 = vld [vmem:[#allocation16_spill] sm:$0xff] }
 0x177   : > { %v854_v60 = vpop.f32.mrf.mxu2 }
 0x178   : > { %v897_v9 = vadd.f32 %v854_v60, %v701_v44  ;;  %v702_v39 = vpop.f32.mrf.mxu1 }
 0x179   : > { %v703_v24 = vadd.f32 %v702_v39, %v2912_v29  ;;  %v1734_v29 = vld [vmem:[%s3517_s3 + $0x48] sm:$0xff] }
 0x17a   : > { %v1017_v35 = vadd.f32 %v974_v21, %v897_v9  ;;  %v1101_v4 = vpop.f32.mrf.mxu0  ;;  %v984_v52 = vpop.f32.mrf.mxu3  ;;  %v3555_v21 = vld [vmem:[#allocation10_spill] sm:$0xff]  ;;  %1800 = vperm.xlu0 %2439, %v1734_v29  }
 0x17c   : > { %v3156_v37 = vadd.f32 %v1099_v34, %v1017_v35  ;;  %v3561_v35 = vld [vmem:[#allocation20_spill] sm:$0xff] }
 0x17f   : > { %v856_v19 = vpop.f32.mrf.mxu2 }
 0x180   : > { %v898_v47 = vadd.f32 %v856_v19, %v703_v24  ;;  %v705_v18 = vpop.f32.mrf.mxu1 }
 0x181   : > { %v706_v58 = vadd.f32 %v705_v18, %v3557_v12  ;;  %v3564_v12 = vld [vmem:[#allocation22_spill] sm:$0xff] }
 0x182   : > { %v1018_v5 = vadd.f32 %v976_v55, %v898_v47  ;;  %v1104_v49 = vpop.f32.mrf.mxu0  ;;  %v986_v42 = vpop.f32.mrf.mxu3 }
 0x183   : > { %2312 = vmatmul.msk.bf16.gmra.mxu1 %vm489_vm2, %v2891_v17 }
 0x184   : > { %2331 = vmatmul.msk.bf16.gmra.mxu2 %vm489_vm2, %v3555_v21  ;;  %v3163_v61 = vadd.f32 %v1101_v4, %v1018_v5  ;;  %v1733_v4 = vld [vmem:[%s3517_s3 + $0x40] sm:$0xff] }
 0x185   : > { %2361 = vmatmul.msk.bf16.gmra.mxu0 %vm489_vm2, %v3556_v50  ;;  %1795 = vperm.xlu2 %2441, %v1733_v4   ;;  %v1737_v21 = vld [vmem:[%s3517_s3 + $0x60] sm:$0xff]  ;;  %v1736_v4 = vld [vmem:[%s3517_s3 + $0x58] sm:$0xff] }
 0x186   : > { %2348 = vmatmul.msk.bf16.gmra.mxu3 %vm489_vm2, %v3558_v53  ;;  %1815 = vperm.xlu0 %2439, %v1737_v21  }
 0x187   : > { %v859_v55 = vpop.f32.mrf.mxu2 }
 0x188   : > { %v899_v20 = vadd.f32 %v859_v55, %v706_v58  ;;  %v707_v10 = vpop.f32.mrf.mxu1 }
 0x189   : > { %v708_v16 = vadd.f32 %v707_v10, %v3559_v45  ;;  %v3566_v45 = vld [vmem:[#allocation23_spill] sm:$0xff] }
 0x18a   : > { %v1019_v17 = vadd.f32 %v979_v0, %v899_v20  ;;  %v1106_v57 = vpop.f32.mrf.mxu0  ;;  %v989_v25 = vpop.f32.mrf.mxu3  ;;  %v3560_v0 = vld [vmem:[#allocation12_spill] sm:$0xff] }
 0x18c   : > { %v3176_v32 = vadd.f32 %v1104_v49, %v1019_v17 }
 0x18d   : > { %1810 = vperm.xlu2 %2441, %v1736_v4  }
 0x18f   : > { %v861_v34 = vpop.f32.mrf.mxu2 }
 0x190   : > { %v900_v14 = vadd.f32 %v861_v34, %v708_v16  ;;  %v710_v44 = vpop.f32.mrf.mxu1  ;;  %v1738_v16 = vld [vmem:[%s3517_s3 + $0x68] sm:$0xff] }
 0x191   : > { %v711_v24 = vadd.f32 %v710_v44, %v3562_v56  ;;  %v3567_v34 = vld [vmem:[#allocation13_spill] sm:$0xff]  ;;  %1820 = vperm.xlu1 %2440, %v1738_v16   ;;  %v1740_v56 = vld [vmem:[%s3517_s3 + $0x78] sm:$0xff] }
 0x192   : > { %v1020_v60 = vadd.f32 %v981_v48, %v900_v14  ;;  %v1109_v9 = vpop.f32.mrf.mxu0  ;;  %v991_v19 = vpop.f32.mrf.mxu3  ;;  %1830 = vperm.xlu0 %2439, %v1740_v56   ;;  %v3570_v16 = vld [vmem:[#allocation18_spill] sm:$0xff] }
 0x193   : > { %2313 = vmatmul.msk.bf16.gmra.mxu1 %vm489_vm2, %v3556_v50  ;;  %v3563_v50 = vld [vmem:[#allocation11_spill] sm:$0xff]  ;;  %v1739_v56 = vld [vmem:[%s3517_s3 + $0x70] sm:$0xff] }
 0x194   : > { %2332 = vmatmul.msk.bf16.gmra.mxu2 %vm489_vm2, %v3560_v0  ;;  %v3183_v39 = vadd.f32 %v1106_v57, %v1020_v60 }
 0x195   : > { %2362 = vmatmul.msk.bf16.gmra.mxu0 %vm489_vm2, %v3561_v35  ;;  %1825 = vperm.xlu2 %2441, %v1739_v56  }
 0x196   : > { %2349 = vmatmul.msk.bf16.gmra.mxu3 %vm489_vm2, %v3563_v50 }
 0x197   : > { %v864_v48 = vpop.f32.mrf.mxu2 }
 0x198   : > { %v901_v47 = vadd.f32 %v864_v48, %v711_v24  ;;  %v712_v18 = vpop.f32.mrf.mxu1  ;;  %v3568_v48 = vld [vmem:[#allocation14_spill] sm:$0xff] }
 0x199   : > { %v713_v58 = vadd.f32 %v712_v18, %v3564_v12  ;;  %v1743_v12 = vld [vmem:[%s3517_s3 + $0x90] sm:$0xff] }
 0x19a   : > { %v1021_v5 = vadd.f32 %v984_v52, %v901_v47  ;;  %v1111_v49 = vpop.f32.mrf.mxu0  ;;  %v994_v20 = vpop.f32.mrf.mxu3  ;;  %v3565_v52 = vld [vmem:[#allocation8_spill] sm:$0xff]  ;;  %1845 = vperm.xlu0 %2439, %v1743_v12  }
 0x19c   : > { %v3196_v29 = vadd.f32 %v1109_v9, %v1021_v5 }
 0x19f   : > { %v866_v55 = vpop.f32.mrf.mxu2 }
 0x1a0   : > { %v902_v10 = vadd.f32 %v866_v55, %v713_v58  ;;  %v715_v17 = vpop.f32.mrf.mxu1  ;;  %v3569_v58 = vld [vmem:[#allocation15_spill] sm:$0xff] }
 0x1a1   : > { %v716_v14 = vadd.f32 %v715_v17, %v3567_v34 }
 0x1a2   : > { %v1022_v57 = vadd.f32 %v986_v42, %v902_v10  ;;  %v1114_v33 = vpop.f32.mrf.mxu0  ;;  %v996_v44 = vpop.f32.mrf.mxu3 }
 0x1a3   : > { %2314 = vmatmul.msk.bf16.gmra.mxu1 %vm489_vm2, %v3561_v35 }
 0x1a4   : > { %2333 = vmatmul.msk.bf16.gmra.mxu2 %vm489_vm2, %v3565_v52  ;;  %v3203_v53 = vadd.f32 %v1111_v49, %v1022_v57 }
 0x1a5   : > { %2363 = vmatmul.msk.bf16.gmra.mxu0 %vm489_vm2, %v3566_v45 }
 0x1a6   : > { %2350 = vmatmul.msk.bf16.gmra.mxu3 %vm489_vm2, %v2768_v26 }
 0x1a7   : > { %v869_v42 = vpop.f32.mrf.mxu2  ;;  %v1756_v12 = vpop.permute.xlu0 %1755 }
 0x1a8   : > { %v903_v60 = vadd.f32 %v869_v42, %v716_v14  ;;  %v717_v9 = vpop.f32.mrf.mxu1  ;;  %v1746_v14 = vld [vmem:[%s3517_s3 + $0xa8] sm:$0xff] }
 0x1a9   : > { %v718_v47 = vadd.f32 %v717_v9, %v3568_v48  ;;  %1860 = vperm.xlu0 %2439, %v1746_v14  }
 0x1aa   : > { %v1023_v0 = vadd.f32 %v989_v25, %v903_v60  ;;  %v1116_v35 = vpop.f32.mrf.mxu0  ;;  %v1419_v25 = vpop.f32.mrf.mxu3 }
 0x1ac   : > { %v3219_v24 = vadd.f32 %v1114_v33, %v1023_v0 }
 0x1af   : > { %v871_v18 = vpop.f32.mrf.mxu2  ;;  %v1761_v14 = vpop.permute.xlu0 %1760 }
 0x1b0   : > { %v904_v5 = vadd.f32 %v871_v18, %v718_v47  ;;  %v720_v49 = vpop.f32.mrf.mxu1 }
 0x1b1   : > { %v721_v55 = vadd.f32 %v720_v49, %v3569_v58 }
 0x1b2   : > { %v1024_v21 = vadd.f32 %v991_v19, %v904_v5  ;;  %v1119_v26 = vpop.f32.mrf.mxu0  ;;  %v1421_v10 = vpop.f32.mrf.mxu3 }
 0x1b3   : > { %2315 = vmatmul.msk.bf16.gmra.mxu1 %vm489_vm2, %v3566_v45 }
 0x1b4   : > { %2334 = vmatmul.msk.bf16.gmra.mxu2 %vm489_vm2, %v2661_v11  ;;  %v3226_v50 = vadd.f32 %v1116_v35, %v1024_v21  ;;  %v1741_v11 = vld [vmem:[%s3517_s3 + $0x80] sm:$0xff]  ;;  %v1747_v21 = vld [vmem:[%s3517_s3 + $0xb0] sm:$0xff] }
 0x1b5   : > { %2364 = vmatmul.msk.bf16.gmra.mxu0 %vm489_vm2, %v2981_v62  ;;  %1835 = vperm.xlu1 %2440, %v1741_v11   ;;  %v1750_v11 = vld [vmem:[%s3517_s3 + $0xc8] sm:$0xff] }
 0x1b6   : > { %2351 = vmatmul.msk.bf16.gmra.mxu3 %vm489_vm2, %v2806_v51  ;;  %v1744_v51 = vld [vmem:[%s3517_s3 + $0x98] sm:$0xff] }
 0x1b7   : > { %v874_v19 = vpop.f32.mrf.mxu2 }
 0x1b8   : > { %v905_v17 = vadd.f32 %v874_v19, %v721_v55  ;;  %v722_v57 = vpop.f32.mrf.mxu1  ;;  %v1752_v55 = vld [vmem:[%s3517_s3 + $0xd8] sm:$0x3f] }
 0x1b9   : > { %v723_v34 = vadd.f32 %v722_v57, %v3570_v16 }
 0x1ba   : > { %v1025_v33 = vadd.f32 %v994_v20, %v905_v17  ;;  %v1121_v52 = vpop.f32.mrf.mxu0  ;;  %v1424_v60 = vpop.f32.mrf.mxu3 }
 0x1bc   : > { %v3239_v45 = vadd.f32 %v1119_v26, %v1025_v33 }
 0x1bd   : > { %1850 = vperm.xlu1 %2440, %v1744_v51  }
 0x1bf   : > { %v876_v42 = vpop.f32.mrf.mxu2 }
 0x1c0   : > { %v906_v20 = vadd.f32 %v876_v42, %v723_v34  ;;  %v1174_v9 = vpop.f32.mrf.mxu1 }
 0x1c2   : > { %v1026_v0 = vadd.f32 %v996_v44, %v906_v20  ;;  %v1539_v35 = vpop.f32.mrf.mxu0  ;;  %v1244_v44 = vadd.f32 %v1174_v9, %v2977_v63  ;;  %v3263_v47 = vpop.f32.mrf.mxu3  ;;  %v3268_v63 = vld [vmem:[%s3516_s2] ss:$0 sm:$0xff] }
 0x1c3   : > { %2316 = vmatmul.msk.bf16.gmra.mxu1 %vm489_vm2, %v2981_v62  ;;  %v1749_v62 = vld [vmem:[%s3517_s3 + $0xc0] sm:$0xff] }
 0x1c4   : > { %2335 = vmatmul.msk.bf16.gmra.mxu2 %vm489_vm2, %v2706_v38  ;;  %v3252_v4 = vadd.f32 %v1121_v52, %v1026_v0  ;;  %1875 = vperm.xlu0 %2439, %v1749_v62  }
 0x1c5   : > { %2365 = vmatmul.msk.bf16.gmra.mxu0 %vm489_vm2, %v2999_v46  ;;  %1865 = vperm.xlu1 %2440, %v1747_v21  }
 0x1c6   : > { %2352 = vmatmul.msk.bf16.gmra.mxu3 %vm489_vm2, %v2728_v54 }
 0x1c7   : > { %v1294_v48 = vpop.f32.mrf.mxu2 }
 0x1c8   : > { %v1364_v38 = vadd.f32 %v1294_v48, %v1244_v44  ;;  %v1176_v18 = vpop.f32.mrf.mxu1 }
 0x1c9   : > { %v1245_v58 = vadd.f32 %v1176_v18, %v2988_v6  ;;  %v1766_v18 = vpop.permute.xlu1 %1765 }
 0x1ca   : > { %v1489_v5 = vadd.f32 %v1419_v25, %v1364_v38  ;;  %v1541_v49 = vpop.f32.mrf.mxu0  ;;  %v3286_v17 = vpop.f32.mrf.mxu3 }
 0x1cc   : > { %v1609_v26 = vadd.f32 %v1539_v35, %v1489_v5  ;;  %1890 = vperm.xlu0 %2439, %v1752_v55   ;;  %v1745_v5 = vld [vmem:[%s3517_s3 + $0xa0] sm:$0xff] }
 0x1cd   : > { %1880 = vperm.xlu1 %2440, %v1750_v11  }
 0x1ce   : > { %v1641_v25 = vadd.f32 %v3268_v63, %v1609_v26 }
 0x1cf   : > { %v1296_v19 = vpop.f32.mrf.mxu2 }
 0x1d0   : > { %v1365_v54 = vadd.f32 %v1296_v19, %v1245_v58  ;;  %v1669_v57 = vmax.f32 %v1641_v25, 0.0  ;;  %v1179_v33 = vpop.f32.mrf.mxu1 }
 0x1d1   : > { %v1246_v34 = vadd.f32 %v1179_v33, %v2995_v36 }
 0x1d2   : > { %v1490_v6 = vadd.f32 %v1421_v10, %v1365_v54  ;;  %1697 = vst [vmem:[%s3284_s16] sm:$0xff] %v1669_v57  ;;  %v1544_v52 = vpop.f32.mrf.mxu0  ;;  %v1742_v10 = vld [vmem:[%s3517_s3 + $0x88] sm:$0xff]  ;;  %v1893_v9 = vmul.f32 %v1756_v12, %v1669_v57 }
 0x1d3   : > { %2317 = vmatmul.msk.bf16.gmra.mxu1 %vm489_vm2, %v2999_v46  ;;  %1840 = vperm.xlu2 %2441, %v1742_v10   ;;  %v3303_v46 = vpop.f32.mrf.mxu3  ;;  %v2443_v10 = vld [vmem:[%s2649_s26 + $0x60] sm:$0xff] }
 0x1d4   : > { %v1610_v16 = vadd.f32 %v1541_v49, %v1490_v6  ;;  %2336 = vmatmul.msk.bf16.gmra.mxu2 %vm489_vm2, %v2749_v2  ;;  %v1957_v62 = vmul.f32 %v1893_v9, %v1669_v57  ;;  %v3312_v49 = vld [vmem:[%s2649_s26 + $0x78] sm:$0xff] }
 0x1d5   : > { %2366 = vmatmul.msk.bf16.gmra.mxu0 %vm489_vm2, %v3017_v23 }
 0x1d6   : > { %v1642_v42 = vadd.f32 %v3268_v63, %v1610_v16  ;;  %2353 = vmatmul.msk.bf16.gmra.mxu3 %vm489_vm2, %v3046_v41  ;;  %v1394_v41 = vshll.u32 %v3312_v49, 16 }
 0x1d7   : > { %v1299_v20 = vpop.f32.mrf.mxu2 }
 0x1d8   : > { %v1366_v2 = vadd.f32 %v1299_v20, %v1246_v34  ;;  %v1670_v0 = vmax.f32 %v1642_v42, 0.0  ;;  %v1181_v35 = vpop.f32.mrf.mxu1  ;;  %v1396_v34 = vrot.slane %v1394_v41, 1  ;;  %v3572_v42 = vld [vmem:[#allocation25_spill] sm:$0xff] }
 0x1da   : > { %v1491_v51 = vadd.f32 %v1424_v60, %v1366_v2  ;;  %1698 = vst [vmem:[%s3284_s16 + $0x8] sm:$0xff] %v1670_v0  ;;  %v1894_v44 = vmul.f32 %v1761_v14, %v1670_v0  ;;  %v1546_v56 = vpop.f32.mrf.mxu0  ;;  %v3571_v60 = vld [vmem:[#allocation24_spill] sm:$0xff] }
 0x1db   : > { %v1247_v26 = vadd.f32 %v1181_v35, %v3571_v60  ;;  %1855 = vperm.xlu2 %2441, %v1745_v5   ;;  %v3316_v25 = vpop.f32.mrf.mxu3  ;;  %v1751_v60 = vld [vmem:[%s3517_s3 + $0xd0] sm:$0xff] }
 0x1dc   : > { %v1611_v48 = vadd.f32 %v1544_v52, %v1491_v51  ;;  %v1921_v38 = vadd.f32 %v1894_v44, %v1893_v9  ;;  %v1958_v36 = vmul.f32 %v1894_v44, %v1670_v0  ;;  %v1771_v9 = vpop.permute.xlu1 %1770 }
 0x1de   : > { %v1985_v21 = vadd.f32 %v1958_v36, %v1957_v62  ;;  %v1643_v12 = vadd.f32 %v3268_v63, %v1611_v48 }
 0x1df   : > { %v1301_v58 = vpop.f32.mrf.mxu2 }
 0x1e0   : > { %v1367_v55 = vadd.f32 %v1301_v58, %v1247_v26  ;;  %v1671_v19 = vmax.f32 %v1643_v12, 0.0  ;;  %v1184_v54 = vpop.f32.mrf.mxu1  ;;  %v3573_v12 = vld [vmem:[#allocation26_spill] sm:$0xff] }
 0x1e1   : > { %v1248_v20 = vadd.f32 %v1184_v54, %v3572_v42  ;;  %v1398_v42 = vshrl.u32 %v3312_v49, 16 }
 0x1e2   : > { %v1492_v57 = vadd.f32 %v3263_v47, %v1367_v55  ;;  %1699 = vst [vmem:[%s3284_s16 + $0x10] sm:$0xff] %v1671_v19  ;;  %v1895_v33 = vmul.f32 %v1766_v18, %v1671_v19  ;;  %v1549_v6 = vpop.f32.mrf.mxu0  ;;  %v1748_v47 = vld [vmem:[%s3517_s3 + $0xb8] sm:$0xff] }
 0x1e3   : > { %2318 = vmatmul.msk.bf16.gmra.mxu1 %vm489_vm2, %v3017_v23  ;;  %1870 = vperm.xlu2 %2441, %v1748_v47   ;;  %v3332_v0 = vpop.f32.mrf.mxu3 }
 0x1e4   : > { %v1612_v52 = vadd.f32 %v1546_v56, %v1492_v57  ;;  %v1922_v11 = vadd.f32 %v1921_v38, %v1895_v33  ;;  %v1959_v16 = vmul.f32 %v1895_v33, %v1671_v19  ;;  %2337 = vmatmul.msk.bf16.gmra.mxu2 %vm489_vm2, %v2443_v10  ;;  %v1397_v56 = vsel %vm377_vm1, %v3063_v59, %v1396_v34 }
 0x1e5   : > { %2367 = vmatmul.msk.bf16.gmra.mxu0 %vm489_vm2, %v3042_v40 }
 0x1e6   : > { %v1986_v14 = vadd.f32 %v1985_v21, %v1959_v16  ;;  %v1644_v2 = vadd.f32 %v3268_v63, %v1612_v52  ;;  %v1776_v21 = vpop.permute.xlu2 %1775  ;;  %2354 = vmatmul.msk.bf16.gmra.mxu3 %vm489_vm2, %v1397_v56  ;;  %v1400_v56 = vor.u32 %v1398_v42, %v1396_v34  ;;  %v1519_v34 = vrot.slane %v3312_v49, 1  ;;  %v1791_v42 = vpop.permute.xlu1 %1790 }
 0x1e7   : > { %v1304_v23 = vpop.f32.mrf.mxu2 }
 0x1e8   : > { %v1368_v35 = vadd.f32 %v1304_v23, %v1248_v20  ;;  %v1672_v51 = vmax.f32 %v1644_v2, 0.0  ;;  %v1186_v44 = vpop.f32.mrf.mxu1  ;;  %v3574_v20 = vld [vmem:[#allocation27_spill] sm:$0xff] }
 0x1e9   : > { %v1249_v58 = vadd.f32 %v1186_v44, %v3573_v12  ;;  %v1786_v12 = vpop.permute.xlu0 %1785 }
 0x1ea   : > { %v1493_v62 = vadd.f32 %v3286_v17, %v1368_v35  ;;  %1700 = vst [vmem:[%s3284_s16 + $0x18] sm:$0xff] %v1672_v51  ;;  %v1896_v48 = vmul.f32 %v1771_v9, %v1672_v51  ;;  %v1551_v38 = vpop.f32.mrf.mxu0  ;;  %v3345_v17 = vrot.slane %v3029_v1, 1 }
 0x1eb   : > { %1885 = vperm.xlu2 %2441, %v1751_v60   ;;  %v3347_v19 = vpop.f32.mrf.mxu3  ;;  %v3575_v60 = vld [vmem:[#allocation28_spill] sm:$0xff] }
 0x1ec   : > { %v1613_v36 = vadd.f32 %v1549_v6, %v1493_v62  ;;  %v1923_v18 = vadd.f32 %v1922_v11, %v1896_v48  ;;  %v1960_v5 = vmul.f32 %v1896_v48, %v1672_v51  ;;  %v1155_v11 = vsel %vm727_vm3, %v3038_v7, %v3345_v17 }
 0x1ee   : > { %v1987_v26 = vadd.f32 %v1986_v14, %v1960_v5  ;;  %v1645_v59 = vadd.f32 %v3268_v63, %v1613_v36  ;;  %v2444_v14 = vld [vmem:[%s2649_s26 + $0x68] sm:$0xff]  ;;  %v1781_v2 = vpop.permute.xlu2 %1780  ;;  %s3445_s26 = sand.u32 1, %s2531_s22  }
 0x1ef   : > { %v1306_v55 = vpop.f32.mrf.mxu2  ;;  %s254_s19 = scalar_lea.vmem [#allocation2], %s3445_s26  ;;  %s260_s29 = scalar_lea.vmem [#allocation4], %s3445_s26 }
 0x1f0   : > { %v1369_v54 = vadd.f32 %v1306_v55, %v1249_v58  ;;  %v1673_v41 = vmax.f32 %v1645_v59, 0.0  ;;  %v1189_v57 = vpop.f32.mrf.mxu1  ;;  %s3456_s20 = sshll.u32 %s254_s19, 4  ;;  %s3461_s9 = sshll.u32 %s260_s29, 4  ;;  %s2044_s20 = int_to_ptr.vmem [resolvable:$true] %s3456_s20  ;;  %s2057_s9 = int_to_ptr.vmem [resolvable:$true] %s3461_s9 }
 0x1f1   : > { %v1250_v9 = vadd.f32 %v1189_v57, %v3574_v20  ;;  %s2026_s25 = scalar_lea.sflag [#allocation3], %s3445_s26 }
 0x1f2   : > { %v1494_v33 = vadd.f32 %v3303_v46, %v1369_v54  ;;  %1701 = vst [vmem:[%s3284_s16 + $0x20] sm:$0xff] %v1673_v41  ;;  %v1897_v6 = vmul.f32 %v1776_v21, %v1673_v41  ;;  %v1554_v52 = vpop.f32.mrf.mxu0 }
 0x1f3   : > { %2319 = vmatmul.msk.bf16.gmra.mxu1 %vm489_vm2, %v3042_v40  ;;  %v1441_v35 = vpop.f32.mrf.mxu3 }
 0x1f4   : > { %v1614_v16 = vadd.f32 %v1551_v38, %v1494_v33  ;;  %v1924_v10 = vadd.f32 %v1923_v18, %v1897_v6  ;;  %v1961_v47 = vmul.f32 %v1897_v6, %v1673_v41  ;;  %2338 = vmatmul.msk.bf16.gmra.mxu2 %vm489_vm2, %v2444_v14 }
 0x1f5   : > { %2368 = vmatmul.msk.bf16.gmra.mxu0 %vm489_vm2, %v1155_v11 }
 0x1f6   : > { %v1988_v46 = vadd.f32 %v1987_v26, %v1961_v47  ;;  %v1646_v7 = vadd.f32 %v3268_v63, %v1614_v16  ;;  %2355 = vmatmul.msk.bf16.gmra.mxu3 %vm489_vm2, %v1400_v56 }
 0x1f7   : > { %v1309_v23 = vpop.f32.mrf.mxu2 }
 0x1f8   : > { %v1370_v51 = vadd.f32 %v1309_v23, %v1250_v9  ;;  %v1674_v44 = vmax.f32 %v1646_v7, 0.0  ;;  %v1191_v40 = vpop.f32.mrf.mxu1 }
 0x1f9   : > { %v1251_v26 = vadd.f32 %v1191_v40, %v3575_v60 }
 0x1fa   : > { %v1495_v62 = vadd.f32 %v3316_v25, %v1370_v51  ;;  %1702 = vst [vmem:[%s3284_s16 + $0x28] sm:$0xff] %v1674_v44  ;;  %v1898_v48 = vmul.f32 %v1781_v2, %v1674_v44  ;;  %v1556_v38 = vpop.f32.mrf.mxu0 }
 0x1fb   : > { %v1444_v55 = vpop.f32.mrf.mxu3 }
 0x1fc   : > { %v1615_v36 = vadd.f32 %v1554_v52, %v1495_v62  ;;  %v1925_v18 = vadd.f32 %v1924_v10, %v1898_v48  ;;  %v1962_v5 = vmul.f32 %v1898_v48, %v1674_v44  ;;  %v1520_v52 = vsel %vm727_vm3, %v3345_v17, %v1519_v34  ;;  %v1796_v48 = vpop.permute.xlu2 %1795 }
 0x1fe   : > { %v1989_v21 = vadd.f32 %v1988_v46, %v1962_v5  ;;  %v1647_v58 = vadd.f32 %v3268_v63, %v1615_v36 }
 0x1ff   : > { %v1311_v59 = vpop.f32.mrf.mxu2 }
 0x200   : > { %v1371_v25 = vadd.f32 %v1311_v59, %v1251_v26  ;;  %v1675_v54 = vmax.f32 %v1647_v58, 0.0  ;;  %v1194_v41 = vpop.f32.mrf.mxu1 }
 0x202   : > { %v1496_v57 = vadd.f32 %v3332_v0, %v1371_v25  ;;  %1703 = vst [vmem:[%s3284_s16 + $0x30] sm:$0xff] %v1675_v54  ;;  %v1899_v33 = vmul.f32 %v1786_v12, %v1675_v54  ;;  %v1559_v6 = vpop.f32.mrf.mxu0  ;;  %v1252_v0 = vadd.f32 %v1194_v41, %v3059_v31  ;;  %v1801_v41 = vpop.permute.xlu0 %1800 }
 0x203   : > { %2320 = vmatmul.msk.bf16.gmra.mxu1 %vm489_vm2, %v1155_v11  ;;  %v1446_v9 = vpop.f32.mrf.mxu3 }
 0x204   : > { %v1616_v16 = vadd.f32 %v1556_v38, %v1496_v57  ;;  %v1926_v10 = vadd.f32 %v1925_v18, %v1899_v33  ;;  %v1963_v47 = vmul.f32 %v1899_v33, %v1675_v54  ;;  %2339 = vmatmul.msk.bf16.gmra.mxu2 %vm489_vm2, %v3029_v1 }
 0x205   : > { %2369 = vmatmul.msk.bf16.gmra.mxu0 %vm489_vm2, %v1520_v52 }
 0x206   : > { %v1990_v14 = vadd.f32 %v1989_v21, %v1963_v47  ;;  %v1648_v46 = vadd.f32 %v3268_v63, %v1616_v16 }
 0x207   : > { %v1314_v20 = vpop.f32.mrf.mxu2 }
 0x208   : > { %v1372_v2 = vadd.f32 %v1314_v20, %v1252_v0  ;;  %v1676_v7 = vmax.f32 %v1648_v46, 0.0  ;;  %v1196_v23 = vpop.f32.mrf.mxu1 }
 0x209   : > { %v1253_v31 = vadd.f32 %v1196_v23, %v3069_v27 }
 0x20a   : > { %v1497_v51 = vadd.f32 %v3347_v19, %v1372_v2  ;;  %1704 = vst [vmem:[%s3284_s16 + $0x38] sm:$0xff] %v1676_v7  ;;  %v1900_v11 = vmul.f32 %v1791_v42, %v1676_v7  ;;  %v1561_v44 = vpop.f32.mrf.mxu0 }
 0x20b   : > { %v1449_v18 = vpop.f32.mrf.mxu3 }
 0x20c   : > { %v1617_v1 = vadd.f32 %v1559_v6, %v1497_v51  ;;  %v1927_v56 = vadd.f32 %v1926_v10, %v1900_v11  ;;  %v1964_v40 = vmul.f32 %v1900_v11, %v1676_v7 }
 0x20e   : > { %v1991_v62 = vadd.f32 %v1990_v14, %v1964_v40  ;;  %v1649_v38 = vadd.f32 %v3268_v63, %v1617_v1 }
 0x20f   : > { %v1316_v36 = vpop.f32.mrf.mxu2 }
 0x210   : > { %v1373_v5 = vadd.f32 %v1316_v36, %v1253_v31  ;;  %v1677_v21 = vmax.f32 %v1649_v38, 0.0  ;;  %v1199_v60 = vpop.f32.mrf.mxu1  ;;  %v1811_v38 = vpop.permute.xlu2 %1810 }
 0x211   : > { %v1254_v54 = vadd.f32 %v1199_v60, %v3079_v22  ;;  %v1806_v22 = vpop.permute.xlu1 %1805 }
 0x212   : > { %v1498_v26 = vadd.f32 %v1441_v35, %v1373_v5  ;;  %1705 = vst [vmem:[%s3284_s16 + $0x40] sm:$0xff] %v1677_v21  ;;  %v1901_v19 = vmul.f32 %v1796_v48, %v1677_v21  ;;  %v1564_v12 = vpop.f32.mrf.mxu0 }
 0x213   : > { %2321 = vmatmul.msk.bf16.gmra.mxu1 %vm489_vm2, %v3345_v17  ;;  %v1451_v33 = vpop.f32.mrf.mxu3 }
 0x214   : > { %v1618_v58 = vadd.f32 %v1561_v44, %v1498_v26  ;;  %v1928_v59 = vadd.f32 %v1927_v56, %v1901_v19  ;;  %v1965_v25 = vmul.f32 %v1901_v19, %v1677_v21  ;;  %2340 = vmatmul.msk.bf16.gmra.mxu2 %vm489_vm2, %v3312_v49 }
 0x215   : > { %2370 = vmatmul.msk.bf16.gmra.mxu0 %vm489_vm2, %v1519_v34 }
 0x216   : > { %v1992_v27 = vadd.f32 %v1991_v62, %v1965_v25  ;;  %v1650_v35 = vadd.f32 %v3268_v63, %v1618_v58 }
 0x217   : > { %v1319_v57 = vpop.f32.mrf.mxu2 }
 0x218   : > { %v1374_v6 = vadd.f32 %v1319_v57, %v1254_v54  ;;  %v1678_v52 = vmax.f32 %v1650_v35, 0.0  ;;  %v1201_v16 = vpop.f32.mrf.mxu1 }
 0x219   : > { %v1255_v42 = vadd.f32 %v1201_v16, %v3086_v28 }
 0x21a   : > { %v1499_v10 = vadd.f32 %v1444_v55, %v1374_v6  ;;  %1706 = vst [vmem:[%s3284_s16 + $0x48] sm:$0xff] %v1678_v52  ;;  %v1902_v17 = vmul.f32 %v1801_v41, %v1678_v52  ;;  %v1566_v47 = vpop.f32.mrf.mxu0  ;;  %v1816_v41 = vpop.permute.xlu0 %1815 }
 0x21b   : > { %v1454_v2 = vpop.f32.mrf.mxu3 }
 0x21c   : > { %v1619_v14 = vadd.f32 %v1564_v12, %v1499_v10  ;;  %v1929_v49 = vadd.f32 %v1928_v59, %v1902_v17  ;;  %v1966_v0 = vmul.f32 %v1902_v17, %v1678_v52 }
 0x21e   : > { %v1993_v34 = vadd.f32 %v1992_v27, %v1966_v0  ;;  %v1651_v46 = vadd.f32 %v3268_v63, %v1619_v14 }
 0x21f   : > { %v1321_v20 = vpop.f32.mrf.mxu2 }
 0x220   : > { %v1375_v7 = vadd.f32 %v1321_v20, %v1255_v42  ;;  %v1679_v23 = vmax.f32 %v1651_v46, 0.0  ;;  %v1204_v51 = vpop.f32.mrf.mxu1  ;;  %v1821_v42 = vpop.permute.xlu1 %1820 }
 0x221   : > { %v1256_v31 = vadd.f32 %v1204_v51, %v3099_v15 }
 0x222   : > { %v1500_v11 = vadd.f32 %v1446_v9, %v1375_v7  ;;  %1707 = vst [vmem:[%s3284_s16 + $0x50] sm:$0xff] %v1679_v23  ;;  %v1903_v55 = vmul.f32 %v1806_v22, %v1679_v23  ;;  %v1569_v44 = vpop.f32.mrf.mxu0 }
 0x223   : > { %v1456_v60 = vpop.f32.mrf.mxu3 }
 0x224   : > { %v1620_v1 = vadd.f32 %v1566_v47, %v1500_v11  ;;  %v1930_v56 = vadd.f32 %v1929_v49, %v1903_v55  ;;  %v1967_v40 = vmul.f32 %v1903_v55, %v1679_v23 }
 0x226   : > { %v1994_v62 = vadd.f32 %v1993_v34, %v1967_v40  ;;  %v1652_v28 = vadd.f32 %v3268_v63, %v1620_v1 }
 0x227   : > { %v1324_v48 = vpop.f32.mrf.mxu2 }
 0x228   : > { %v1376_v36 = vadd.f32 %v1324_v48, %v1256_v31  ;;  %v1680_v5 = vmax.f32 %v1652_v28, 0.0  ;;  %v1206_v21 = vpop.f32.mrf.mxu1 }
 0x229   : > { %v1257_v27 = vadd.f32 %v1206_v21, %v3106_v13 }
 0x22a   : > { %v1501_v26 = vadd.f32 %v1449_v18, %v1376_v36  ;;  %1708 = vst [vmem:[%s3284_s16 + $0x58] sm:$0xff] %v1680_v5  ;;  %v1904_v9 = vmul.f32 %v1811_v38, %v1680_v5  ;;  %v1571_v19 = vpop.f32.mrf.mxu0 }
 0x22b   : > { %v1459_v10 = vpop.f32.mrf.mxu3 }
 0x22c   : > { %v1621_v12 = vadd.f32 %v1569_v44, %v1501_v26  ;;  %v1931_v58 = vadd.f32 %v1930_v56, %v1904_v9  ;;  %v1968_v59 = vmul.f32 %v1904_v9, %v1680_v5 }
 0x22e   : > { %v1995_v25 = vadd.f32 %v1994_v62, %v1968_v59  ;;  %v1653_v15 = vadd.f32 %v3268_v63, %v1621_v12  ;;  %v1826_v62 = vpop.permute.xlu2 %1825 }
 0x22f   : > { %v1326_v54 = vpop.f32.mrf.mxu2 }
 0x230   : > { %v1377_v35 = vadd.f32 %v1326_v54, %v1257_v27  ;;  %v1681_v57 = vmax.f32 %v1653_v15, 0.0  ;;  %v1209_v6 = vpop.f32.mrf.mxu1  ;;  %v1831_v27 = vpop.permute.xlu0 %1830 }
 0x231   : > { %v1258_v0 = vadd.f32 %v1209_v6, %v3116_v3 }
 0x232   : > { %v1502_v52 = vadd.f32 %v1451_v33, %v1377_v35  ;;  %1709 = vst [vmem:[%s3284_s16 + $0x60] sm:$0xff] %v1681_v57  ;;  %v1905_v18 = vmul.f32 %v1816_v41, %v1681_v57  ;;  %v1574_v16 = vpop.f32.mrf.mxu0 }
 0x233   : > { %v1461_v44 = vpop.f32.mrf.mxu3 }
 0x234   : > { %v1622_v17 = vadd.f32 %v1571_v19, %v1502_v52  ;;  %v1932_v47 = vadd.f32 %v1931_v58, %v1905_v18  ;;  %v1969_v14 = vmul.f32 %v1905_v18, %v1681_v57 }
 0x236   : > { %v1996_v49 = vadd.f32 %v1995_v25, %v1969_v14  ;;  %v1654_v13 = vadd.f32 %v3268_v63, %v1622_v17  ;;  %v1836_v17 = vpop.permute.xlu1 %1835 }
 0x237   : > { %v1329_v34 = vpop.f32.mrf.mxu2 }
 0x238   : > { %v1378_v22 = vadd.f32 %v1329_v34, %v1258_v0  ;;  %v1682_v46 = vmax.f32 %v1654_v13, 0.0  ;;  %v1211_v20 = vpop.f32.mrf.mxu1 }
 0x239   : > { %v1259_v56 = vadd.f32 %v1211_v20, %v3123_v43 }
 0x23a   : > { %v1503_v7 = vadd.f32 %v1454_v2, %v1378_v22  ;;  %1710 = vst [vmem:[%s3284_s16 + $0x68] sm:$0xff] %v1682_v46  ;;  %v1906_v33 = vmul.f32 %v1821_v42, %v1682_v46  ;;  %v1576_v23 = vpop.f32.mrf.mxu0 }
 0x23b   : > { %v1464_v58 = vpop.f32.mrf.mxu3 }
 0x23c   : > { %v1623_v51 = vadd.f32 %v1574_v16, %v1503_v7  ;;  %v1933_v11 = vadd.f32 %v1932_v47, %v1906_v33  ;;  %v1970_v55 = vmul.f32 %v1906_v33, %v1682_v46 }
 0x23e   : > { %v1997_v1 = vadd.f32 %v1996_v49, %v1970_v55  ;;  %v1655_v3 = vadd.f32 %v3268_v63, %v1623_v51 }
 0x23f   : > { %v1331_v40 = vpop.f32.mrf.mxu2 }
 0x240   : > { %v1379_v31 = vadd.f32 %v1331_v40, %v1259_v56  ;;  %v1683_v28 = vmax.f32 %v1655_v3, 0.0  ;;  %v1214_v48 = vpop.f32.mrf.mxu1 }
 0x241   : > { %v1260_v43 = vadd.f32 %v1214_v48, %v3133_v8 }
 0x242   : > { %v1504_v38 = vadd.f32 %v1456_v60, %v1379_v31  ;;  %1711 = vst [vmem:[%s3284_s16 + $0x70] sm:$0xff] %v1683_v28  ;;  %v1907_v2 = vmul.f32 %v1826_v62, %v1683_v28  ;;  %v1579_v36 = vpop.f32.mrf.mxu0 }
 0x243   : > { %v1466_v0 = vpop.f32.mrf.mxu3 }
 0x244   : > { %v1624_v5 = vadd.f32 %v1576_v23, %v1504_v38  ;;  %v1934_v21 = vadd.f32 %v1933_v11, %v1907_v2  ;;  %v1971_v26 = vmul.f32 %v1907_v2, %v1683_v28  ;;  %v1841_v11 = vpop.permute.xlu2 %1840 }
 0x246   : > { %v1998_v9 = vadd.f32 %v1997_v1, %v1971_v26  ;;  %v1656_v19 = vadd.f32 %v3268_v63, %v1624_v5  ;;  %v1846_v5 = vpop.permute.xlu0 %1845 }
 0x247   : > { %v1334_v12 = vpop.f32.mrf.mxu2 }
 0x248   : > { %v1684_v59 = vmax.f32 %v1656_v19, 0.0  ;;  %v1380_v25 = vadd.f32 %v1334_v12, %v1260_v43  ;;  %v1216_v15 = vpop.f32.mrf.mxu1 }
 0x249   : > { %v1261_v18 = vadd.f32 %v1216_v15, %v3140_v30 }
 0x24a   : > { %1712 = vst [vmem:[%s3284_s16 + $0x78] sm:$0xff] %v1684_v59  ;;  %v1908_v60 = vmul.f32 %v1831_v27, %v1684_v59  ;;  %v1505_v54 = vadd.f32 %v1459_v10, %v1380_v25  ;;  %v1581_v41 = vpop.f32.mrf.mxu0 }
 0x24c   : > { %v1935_v35 = vadd.f32 %v1934_v21, %v1908_v60  ;;  %v1972_v57 = vmul.f32 %v1908_v60, %v1684_v59  ;;  %v1625_v6 = vadd.f32 %v1579_v36, %v1505_v54 }
 0x24e   : > { %v1999_v52 = vadd.f32 %v1998_v9, %v1972_v57  ;;  %v1657_v16 = vadd.f32 %v3268_v63, %v1625_v6 }
 0x24f   : > { %v1336_v8 = vpop.f32.mrf.mxu2 }
 0x250   : > { %v1685_v47 = vmax.f32 %v1657_v16, 0.0  ;;  %v1381_v14 = vadd.f32 %v1336_v8, %v1261_v18  ;;  %v1219_v49 = vpop.f32.mrf.mxu1 }
 0x251   : > { %v1262_v30 = vadd.f32 %v1219_v49, %v3156_v37 }
 0x252   : > { %1713 = vst [vmem:[%s3284_s16 + $0x80] sm:$0xff] %v1685_v47  ;;  %v1909_v13 = vmul.f32 %v1836_v17, %v1685_v47  ;;  %v1506_v34 = vadd.f32 %v1461_v44, %v1381_v14  ;;  %v1584_v10 = vpop.f32.mrf.mxu0  ;;  %v1469_v44 = vpop.f32.mrf.mxu3 }
 0x254   : > { %v1936_v42 = vadd.f32 %v1935_v35, %v1909_v13  ;;  %v1973_v22 = vmul.f32 %v1909_v13, %v1685_v47  ;;  %v1626_v46 = vadd.f32 %v1581_v41, %v1506_v34  ;;  %v1851_v41 = vpop.permute.xlu1 %1850  ;;  %v1856_v34 = vpop.permute.xlu2 %1855 }
 0x256   : > { %v2000_v20 = vadd.f32 %v1999_v52, %v1973_v22  ;;  %v1658_v7 = vadd.f32 %v3268_v63, %v1626_v46 }
 0x257   : > { %v1339_v33 = vpop.f32.mrf.mxu2 }
 0x258   : > { %v1686_v23 = vmax.f32 %v1658_v7, 0.0  ;;  %v1382_v51 = vadd.f32 %v1339_v33, %v1262_v30  ;;  %v1221_v55 = vpop.f32.mrf.mxu1 }
 0x259   : > { %v1263_v38 = vadd.f32 %v1221_v55, %v3163_v61 }
 0x25a   : > { %1714 = vst [vmem:[%s3284_s16 + $0x88] sm:$0xff] %v1686_v23  ;;  %v1910_v1 = vmul.f32 %v1841_v11, %v1686_v23  ;;  %v1507_v56 = vadd.f32 %v1464_v58, %v1382_v51  ;;  %v1586_v3 = vpop.f32.mrf.mxu0  ;;  %v1471_v59 = vpop.f32.mrf.mxu3 }
 0x25b   : > { %v1861_v11 = vpop.permute.xlu0 %1860 }
 0x25c   : > { %v1937_v40 = vadd.f32 %v1936_v42, %v1910_v1  ;;  %v1974_v62 = vmul.f32 %v1910_v1, %v1686_v23  ;;  %v1627_v31 = vadd.f32 %v1584_v10, %v1507_v56 }
 0x25e   : > { %v2001_v28 = vadd.f32 %v2000_v20, %v1974_v62  ;;  %v1659_v48 = vadd.f32 %v3268_v63, %v1627_v31 }
 0x25f   : > { %v1341_v37 = vpop.f32.mrf.mxu2 }
 0x260   : > { %v1687_v2 = vmax.f32 %v1659_v48, 0.0  ;;  %v1383_v36 = vadd.f32 %v1341_v37, %v1263_v38  ;;  %v1224_v21 = vpop.f32.mrf.mxu1 }
 0x261   : > { %v1264_v15 = vadd.f32 %v1224_v21, %v3176_v32  ;;  %v1866_v21 = vpop.permute.xlu1 %1865 }
 0x262   : > { %1715 = vst [vmem:[%s3284_s16 + $0x90] sm:$0xff] %v1687_v2  ;;  %v1911_v26 = vmul.f32 %v1846_v5, %v1687_v2  ;;  %v1508_v9 = vadd.f32 %v1466_v0, %v1383_v36  ;;  %v1589_v19 = vpop.f32.mrf.mxu0  ;;  %v1474_v32 = vpop.f32.mrf.mxu3 }
 0x264   : > { %v1938_v43 = vadd.f32 %v1937_v40, %v1911_v26  ;;  %v1975_v12 = vmul.f32 %v1911_v26, %v1687_v2  ;;  %v1628_v58 = vadd.f32 %v1586_v3, %v1508_v9 }
 0x266   : > { %v2002_v25 = vadd.f32 %v2001_v28, %v1975_v12  ;;  %v1660_v27 = vadd.f32 %v3268_v63, %v1628_v58 }
 0x267   : > { %v1344_v61 = vpop.f32.mrf.mxu2 }
 0x268   : > { %v1688_v60 = vmax.f32 %v1660_v27, 0.0  ;;  %v1384_v54 = vadd.f32 %v1344_v61, %v1264_v15  ;;  %v1226_v35 = vpop.f32.mrf.mxu1 }
 0x269   : > { %v1265_v14 = vadd.f32 %v1226_v35, %v3183_v39 }
 0x26a   : > { %1716 = vst [vmem:[%s3284_s16 + $0x98] sm:$0xff] %v1688_v60  ;;  %v1912_v57 = vmul.f32 %v1851_v41, %v1688_v60  ;;  %v1509_v6 = vadd.f32 %v1469_v44, %v1384_v54  ;;  %v1591_v52 = vpop.f32.mrf.mxu0  ;;  %v1476_v3 = vpop.f32.mrf.mxu3 }
 0x26b   : > { %v1871_v41 = vpop.permute.xlu2 %1870 }
 0x26c   : > { %v1939_v18 = vadd.f32 %v1938_v43, %v1912_v57  ;;  %v1976_v16 = vmul.f32 %v1912_v57, %v1688_v60  ;;  %v1629_v8 = vadd.f32 %v1589_v19, %v1509_v6 }
 0x26e   : > { %v2003_v17 = vadd.f32 %v2002_v25, %v1976_v16  ;;  %v1661_v47 = vadd.f32 %v3268_v63, %v1629_v8 }
 0x26f   : > { %v1346_v49 = vpop.f32.mrf.mxu2 }
 0x270   : > { %v1689_v0 = vmax.f32 %v1661_v47, 0.0  ;;  %v1385_v13 = vadd.f32 %v1346_v49, %v1265_v14  ;;  %v1229_v10 = vpop.f32.mrf.mxu1 }
 0x271   : > { %v1266_v51 = vadd.f32 %v1229_v10, %v3196_v29 }
 0x272   : > { %1717 = vst [vmem:[%s3284_s16 + $0xa0] sm:$0xff] %v1689_v0  ;;  %v1913_v42 = vmul.f32 %v1856_v34, %v1689_v0  ;;  %v1510_v22 = vadd.f32 %v1471_v59, %v1385_v13  ;;  %v1594_v46 = vpop.f32.mrf.mxu0  ;;  %v1479_v43 = vpop.f32.mrf.mxu3 }
 0x273   : > { %v1876_v13 = vpop.permute.xlu0 %1875 }
 0x274   : > { %v1940_v20 = vadd.f32 %v1939_v18, %v1913_v42  ;;  %v1977_v7 = vmul.f32 %v1913_v42, %v1689_v0  ;;  %v1630_v30 = vadd.f32 %v1591_v52, %v1510_v22 }
 0x276   : > { %v2004_v33 = vadd.f32 %v2003_v17, %v1977_v7  ;;  %v1662_v23 = vadd.f32 %v3268_v63, %v1630_v30 }
 0x277   : > { %v1349_v39 = vpop.f32.mrf.mxu2 }
 0x278   : > { %v1690_v55 = vmax.f32 %v1662_v23, 0.0  ;;  %v1386_v1 = vadd.f32 %v1349_v39, %v1266_v51  ;;  %v1231_v56 = vpop.f32.mrf.mxu1 }
 0x279   : > { %v1267_v2 = vadd.f32 %v1231_v56, %v3203_v53 }
 0x27a   : > { %1718 = vst [vmem:[%s3284_s16 + $0xa8] sm:$0xff] %v1690_v55  ;;  %v1914_v44 = vmul.f32 %v1861_v11, %v1690_v55  ;;  %v1511_v40 = vadd.f32 %v1474_v32, %v1386_v1  ;;  %v1596_v62 = vpop.f32.mrf.mxu0  ;;  %v1481_v8 = vpop.f32.mrf.mxu3 }
 0x27b   : > { %v1881_v11 = vpop.permute.xlu1 %1880 }
 0x27c   : > { %v1941_v31 = vadd.f32 %v1940_v20, %v1914_v44  ;;  %v1978_v28 = vmul.f32 %v1914_v44, %v1690_v55  ;;  %v1631_v48 = vadd.f32 %v1594_v46, %v1511_v40 }
 0x27e   : > { %v2005_v38 = vadd.f32 %v2004_v33, %v1978_v28  ;;  %v1663_v37 = vadd.f32 %v3268_v63, %v1631_v48 }
 0x27f   : > { %v1351_v29 = vpop.f32.mrf.mxu2 }
 0x280   : > { %v1691_v36 = vmax.f32 %v1663_v37, 0.0  ;;  %v1387_v5 = vadd.f32 %v1351_v29, %v1267_v2  ;;  %v1234_v26 = vpop.f32.mrf.mxu1  ;;  %v1886_v2 = vpop.permute.xlu2 %1885 }
 0x281   : > { %v1268_v61 = vadd.f32 %v1234_v26, %v3219_v24 }
 0x282   : > { %1719 = vst [vmem:[%s3284_s16 + $0xb0] sm:$0xff] %v1691_v36  ;;  %v1915_v9 = vmul.f32 %v1866_v21, %v1691_v36  ;;  %v1512_v19 = vadd.f32 %v1476_v3, %v1387_v5  ;;  %v1599_v25 = vpop.f32.mrf.mxu0  ;;  %v1484_v23 = vpop.f32.mrf.mxu3 }
 0x284   : > { %v1942_v12 = vadd.f32 %v1941_v31, %v1915_v9  ;;  %v1979_v58 = vmul.f32 %v1915_v9, %v1691_v36  ;;  %v1632_v59 = vadd.f32 %v1596_v62, %v1512_v19 }
 0x286   : > { %v2006_v27 = vadd.f32 %v2005_v38, %v1979_v58  ;;  %v1664_v15 = vadd.f32 %v3268_v63, %v1632_v59 }
 0x287   : > { %v1354_v53 = vpop.f32.mrf.mxu2 }
 0x288   : > { %v1692_v60 = vmax.f32 %v1664_v15, 0.0  ;;  %v1388_v54 = vadd.f32 %v1354_v53, %v1268_v61  ;;  %v1236_v35 = vpop.f32.mrf.mxu1 }
 0x289   : > { %v1269_v14 = vadd.f32 %v1236_v35, %v3226_v50 }
 0x28a   : > { %1720 = vst [vmem:[%s3284_s16 + $0xb8] sm:$0xff] %v1692_v60  ;;  %v1916_v57 = vmul.f32 %v1871_v41, %v1692_v60  ;;  %v1513_v6 = vadd.f32 %v1479_v43, %v1388_v54  ;;  %v1601_v49 = vpop.f32.mrf.mxu0  ;;  %v1486_v29 = vpop.f32.mrf.mxu3 }
 0x28c   : > { %v1943_v52 = vadd.f32 %v1942_v12, %v1916_v57  ;;  %v1980_v18 = vmul.f32 %v1916_v57, %v1692_v60  ;;  %v1633_v16 = vadd.f32 %v1599_v25, %v1513_v6 }
 0x28e   : > { %v2007_v17 = vadd.f32 %v2006_v27, %v1980_v18  ;;  %v1665_v47 = vadd.f32 %v3268_v63, %v1633_v16 }
 0x28f   : > { %v1356_v24 = vpop.f32.mrf.mxu2 }
 0x290   : > { %v1693_v32 = vmax.f32 %v1665_v47, 0.0  ;;  %v1389_v0 = vadd.f32 %v1356_v24, %v1269_v14  ;;  %v1239_v34 = vpop.f32.mrf.mxu1 }
 0x291   : > { %v1270_v33 = vadd.f32 %v1239_v34, %v3239_v45 }
 0x292   : > { %1721 = vst [vmem:[%s3284_s16 + $0xc0] sm:$0xff] %v1693_v32  ;;  %v1917_v10 = vmul.f32 %v1876_v13, %v1693_v32  ;;  %v1514_v42 = vadd.f32 %v1481_v8, %v1389_v0  ;;  %v1604_v55 = vpop.f32.mrf.mxu0 }
 0x294   : > { %v1944_v22 = vadd.f32 %v1943_v52, %v1917_v10  ;;  %v1981_v46 = vmul.f32 %v1917_v10, %v1693_v32  ;;  %v1634_v20 = vadd.f32 %v1601_v49, %v1514_v42 }
 0x296   : > { %v2008_v7 = vadd.f32 %v2007_v17, %v1981_v46  ;;  %v1666_v30 = vadd.f32 %v3268_v63, %v1634_v20 }
 0x297   : > { %v1359_v50 = vpop.f32.mrf.mxu2 }
 0x298   : > { %v1694_v51 = vmax.f32 %v1666_v30, 0.0  ;;  %v1390_v39 = vadd.f32 %v1359_v50, %v1270_v33  ;;  %v1241_v3 = vpop.f32.mrf.mxu1 }
 0x299   : > { %v1271_v48 = vadd.f32 %v1241_v3, %v3252_v4  ;;  %v1891_v4 = vpop.permute.xlu0 %1890 }
 0x29a   : > { %1722 = vst [vmem:[%s3284_s16 + $0xc8] sm:$0xff] %v1694_v51  ;;  %v1918_v1 = vmul.f32 %v1881_v11, %v1694_v51  ;;  %v1515_v56 = vadd.f32 %v1484_v23, %v1390_v39  ;;  %v1606_v21 = vpop.f32.mrf.mxu0 }
 0x29c   : > { %v1945_v44 = vadd.f32 %v1944_v22, %v1918_v1  ;;  %v1982_v40 = vmul.f32 %v1918_v1, %v1694_v51  ;;  %v1635_v62 = vadd.f32 %v1604_v55, %v1515_v56 }
 0x29e   : > { %v2009_v31 = vadd.f32 %v2008_v7, %v1982_v40  ;;  %v1667_v28 = vadd.f32 %v3268_v63, %v1635_v62 }
 0x29f   : > { %v1361_v45 = vpop.f32.mrf.mxu2 }
 0x2a0   : > { %v1695_v38 = vmax.f32 %v1667_v28, 0.0  ;;  %v1391_v37 = vadd.f32 %v1361_v45, %v1271_v48 }
 0x2a2   : > { %1723 = vst [vmem:[%s3284_s16 + $0xd0] sm:$0xff] %v1695_v38  ;;  %v1919_v36 = vmul.f32 %v1886_v2, %v1695_v38  ;;  %v1516_v5 = vadd.f32 %v1486_v29, %v1391_v37 }
 0x2a4   : > { %v1983_v26 = vmul.f32 %v1919_v36, %v1695_v38  ;;  %v1636_v9 = vadd.f32 %v1606_v21, %v1516_v5  ;;  %v1946_v19 = vadd.f32 %v1945_v44, %v1919_v36 }
 0x2a6   : > { %v1668_v43 = vadd.f32 %v3268_v63, %v1636_v9  ;;  %v2010_v12 = vadd.f32 %v2009_v31, %v1983_v26 }
 0x2a8   : > { %v1696_v58 = vmax.f32 %v1668_v43, 0.0 }
 0x2aa   : > { %1724 = vst [vmem:[%s3284_s16 + $0xd8] sm:$0x3f] %v1696_v58  ;;  %v1920_v59 = vmul.f32 %v1891_v4, %v1696_v58 }
 0x2ac   : > { %v1984_v25 = vmul.f32 %v1920_v59, %v1696_v58  ;;  %v1948_v27 = vsel %vm1947_vm4, %v1920_v59, 0.0 }
 0x2ad   : > { %v1949_v15 = vadd.f32 %v1948_v27, %v1946_v19 }
 0x2ae   : > { %v2011_v61 = vsel %vm1947_vm4, %v1984_v25, 0.0 }
 0x2af   : > { %v1950_v53 = vrot.slane %v1949_v15, 4  ;;  %v2012_v60 = vadd.f32 %v2011_v61, %v2010_v12 }
 0x2b1   : > { %v1951_v54 = vadd.f32 %v1950_v53, %v1949_v15  ;;  %v2013_v63 = vrot.slane %v2012_v60, 4 }
 0x2b3   : > { %v1952_v41 = vrot.slane %v1951_v54, 2  ;;  %v2014_v35 = vadd.f32 %v2013_v63, %v2012_v60 }
 0x2b5   : > { %v1953_v57 = vadd.f32 %v1952_v41, %v1951_v54  ;;  %v2015_v6 = vrot.slane %v2014_v35, 2 }
 0x2b7   : > { %v1954_v52 = vrot.slane %v1953_v57, 1  ;;  %v2016_v18 = vadd.f32 %v2015_v6, %v2014_v35 }
 0x2b9   : > { %v1955_v16 = vadd.f32 %v1954_v52, %v1953_v57  ;;  %v2017_v8 = vrot.slane %v2016_v18, 1 }
 0x2bb   : > { %1956 = vst [vmem:[%s254_s19] sm:$0x1] %v1955_v16  ;;  %v2018_v17 = vadd.f32 %v2017_v8, %v2016_v18 }
 0x2bc   : > { %2472 = shalt.err (!%p2469_p3)
}
 0x2bd   : > { %2394 = dma.vmem_to_hbm [thread:$0]  (%p2615_p5), %s2044_s20, 16, %s2046_s28, %s2026_s25   ;;  %2019 = vst [vmem:[%s260_s29] sm:$0x1] %v2018_v17 }
 0x2be   : > { %s2030_s18 = scalar_lea.sflag [#allocation5], %s3445_s26  ;;  %s2487_s19 = sshra.s32 %s2059_s10, 4  ;;  %s2488_s19 = int_to_ptr.hbm [resolvable:$true] %s2487_s19 }
 0x2bf   : > { %s2489_s13 = scalar_lea.hbm %s2488_s19, 1  ;;  %s2493_s15 = scalar_lea.hbm %s3520_s6, 2 }
 0x2c0   : > { %p2490_p4 = scmp.ne.s32.totalorder %s2488_s19, %s2489_s13  ;;  %p2494_p9 = scmp.lt.s32.totalorder %s2488_s19, %s3520_s6 }
 0x2c1   : > { %p2495_p10 = scmp.lt.s32.totalorder %s2493_s15, %s2489_s13 }
 0x2c2   : > { %p2491_p7 = pnand %p2490_p4, %p2615_p5 }
 0x2c3   : > { %p2496_p11 = por %p2495_p10, %p2494_p9 }
 0x2c4   : > { %p2492_p8 = pneg %p2491_p7 }
 0x2c6   : > { %p2497_p12 = pnand %p2496_p11, %p2492_p8 }
 0x2c8   : > { %2500 = shalt.err (!%p2497_p12)
}
 0x2c9   : > { %2395 = dma.vmem_to_hbm [thread:$0]  (%p2615_p5), %s2057_s9, 16, %s2059_s10, %s2030_s18  }
 0x2ca PF: > { %p2405_p13 = scmp.ge.s32.totalorder %s2539_s24, 2  ;;  %s2078_s26 = sand.u32 1, %s2527_s21  }
 0x2cb   : > { %s2079_s20 = scalar_lea.sflag [#allocation3], %s2078_s26 }
 0x2cc   : > { %p2399_p0 = pnand %p2405_p13, %p2619_p6 }
 0x2ce   : > { %p2400_p1 = pneg %p2399_p0 }
 0x2d0   : > { %2518 = dma.done.wait (%p2400_p1), %s2079_s20, 16  }
 0x2d1   : > { %2520 = vsyncadd (%p2400_p1), %s2079_s20, 4294967280  ;;  %s2088_s28 = scalar_lea.sflag [#allocation5], %s2078_s26 }
 0x2d2   : > { %2522 = dma.done.wait (%p2400_p1), %s2088_s28, 16  }
 0x2d3   : > { %2524 = vsyncadd (%p2400_p1), %s2088_s28, 4294967280  ;;  %p20_p5 = scmp.ge.s32.totalorder %s2602_s27, 4   ;;  %s3576_s21 = smov %s2531_s22 }
 0x2d4   : > { %s3577_s22 = smov %s2535_s23  ;;  %s3578_s23 = smov %s2613_s30 }
 0x2d5   : > { %s3579_s24 = smov %s2602_s27  ;;  %22 = sbr.rel (!%p20_p5) target bundleno = 5 (0x5), region = 108 }
 0x2da   :  { %2093 = vsyncpa [#allocation3], 1 }
 0x2db   :  { %2095 = vsyncpa [#allocation3 + $0x1], 1 }
 0x2dc   :  { %2096 = vsyncpa [#allocation5], 1 }
 0x2dd   :  { %2098 = vsyncpa [#allocation5 + $0x1], 1 }

</bundles_post_ra>
